<compile_context>
chip_gen: v6e
topology: v6e:2x2x1
jax: 0.10.0
libtpu: 0.0.40
codegen_flags: <defaults>
</compile_context>

<pallas_src>
import numpy as np
import jax
import jax.numpy as jnp
from jax import lax
from jax.experimental import pallas as pl
from jax.experimental.pallas import tpu as pltpu  # noqa: F401  (TPU backend assumed)

# Small, self-consistent shapes implied by the module.
S = 8            # sequence length
B = 2            # batch
D = 32           # d_model (encoder_layer.self_attn.d_model)
H = 4            # attention heads
DH = D // H      # head dim
F = 64           # feed-forward hidden dim
NUM_LAYERS = 2
EPS = 1e-5
T = S * B        # total tokens handled in one shot


# ---------------------------------------------------------------------------
# Kernel: PE add + NUM_LAYERS x (shared-weight) encoder layer, fully fused.
# ---------------------------------------------------------------------------
def encoder_kernel(x_ref, pe_ref, bias_ref,
                   wqkv, bqkv, wo, bo,
                   g1, be1, w1, b1, w2, b2, g2, be2,
                   o_ref):
    # x_ref/pe_ref: (T, D) seq-major tokens (row t = s*B + b); bias_ref: (T, T)
    x = x_ref[...] + pe_ref[...]                     # positional encoding add
    bias = bias_ref[...]                             # 0 on same-batch, -1e30 across batches
    scale = jnp.float32(1.0 / np.sqrt(DH))

    for _ in range(NUM_LAYERS):                      # shared weights -> unrolled reuse
        # --- multi-head self-attention (packed QKV projection) -----------
        qkv = jnp.dot(x, wqkv[...], preferred_element_type=jnp.float32) + bqkv[...]  # (T, 3D)
        q = qkv[:, 0:D] * scale                      # scale folded into q once
        k = qkv[:, D:2 * D]
        v = qkv[:, 2 * D:3 * D]

        head_outs = []
        for h in range(H):                           # H=4 static loop; each head does
            sl = slice(h * DH, (h + 1) * DH)         # ALL batch elems in one (T,T) matmul
            s = lax.dot_general(q[:, sl], k[:, sl],
                                (((1,), (1,)), ((), ())),
                                preferred_element_type=jnp.float32) + bias
            s = s - jnp.max(s, axis=-1, keepdims=True)
            p = jnp.exp(s)                           # masked entries underflow to exactly 0
            p = p * pl.reciprocal(jnp.sum(p, axis=-1, keepdims=True), approx=True)
            head_outs.append(jnp.dot(p, v[:, sl], preferred_element_type=jnp.float32))
        attn = jnp.concatenate(head_outs, axis=-1)   # (T, D)
        attn = jnp.dot(attn, wo[...], preferred_element_type=jnp.float32) + bo[...]

        # --- residual + layernorm 1 (dropout omitted: eval mode) ----------
        y = x + attn
        mu = jnp.mean(y, axis=-1, keepdims=True)
        var = jnp.mean((y - mu) ** 2, axis=-1, keepdims=True)
        y = (y - mu) * lax.rsqrt(var + EPS) * g1[...] + be1[...]

        # --- feed-forward --------------------------------------------------
        hdn = jnp.dot(y, w1[...], preferred_element_type=jnp.float32) + b1[...]
        hdn = jnp.maximum(hdn, 0.0)                  # relu
        ff = jnp.dot(hdn, w2[...], preferred_element_type=jnp.float32) + b2[...]

        # --- residual + layernorm 2 ----------------------------------------
        z = y + ff
        mu2 = jnp.mean(z, axis=-1, keepdims=True)
        var2 = jnp.mean((z - mu2) ** 2, axis=-1, keepdims=True)
        x = (z - mu2) * lax.rsqrt(var2 + EPS) * g2[...] + be2[...]

    # TODO(synk): dropout (PE + layer) omitted — eval-mode parity only.
    o_ref[...] = x


# ---------------------------------------------------------------------------
# Host-side tables / parameters
# ---------------------------------------------------------------------------
def make_pe_rows():
    """Sinusoidal PE expanded to one row per (seq-major) token: row s*B+b = pe[s]."""
    pos = np.arange(S, dtype=np.float32)[:, None]
    div = np.exp(np.arange(0, D, 2, dtype=np.float32) * (-np.log(10000.0) / D))
    pe = np.zeros((S, D), dtype=np.float32)
    pe[:, 0::2] = np.sin(pos * div)
    pe[:, 1::2] = np.cos(pos * div)
    return jnp.asarray(np.repeat(pe, B, axis=0))     # (T, D)


def make_attn_bias():
    """Block-diagonal additive mask: 0 when tokens share a batch element, -1e30 otherwise."""
    t = np.arange(T)
    same = (t[:, None] % B) == (t[None, :] % B)      # seq-major flatten => batch = t % B
    return jnp.asarray(np.where(same, 0.0, -1e30).astype(np.float32))  # (T, T)


def init_params(key):
    ks = jax.random.split(key, 6)

    def w(k, shape, fan_in):
        return jax.random.normal(k, shape, jnp.float32) / np.sqrt(fan_in)

    wq = w(ks[0], (D, D), D)
    wk = w(ks[1], (D, D), D)
    wv = w(ks[2], (D, D), D)
    wqkv = jnp.concatenate([wq, wk, wv], axis=1)     # packed (D, 3D)
    bqkv = jnp.zeros((1, 3 * D), jnp.float32)
    wo = w(ks[3], (D, D), D)
    bo = jnp.zeros((1, D), jnp.float32)
    g1 = jnp.ones((1, D), jnp.float32)
    be1 = jnp.zeros((1, D), jnp.float32)
    w1 = w(ks[4], (D, F), D)
    b1 = jnp.zeros((1, F), jnp.float32)
    w2 = w(ks[5], (F, D), F)
    b2 = jnp.zeros((1, D), jnp.float32)
    g2 = jnp.ones((1, D), jnp.float32)
    be2 = jnp.zeros((1, D), jnp.float32)
    # order matches kernel signature after (x, pe, bias):
    return (wqkv, bqkv, wo, bo, g1, be1, w1, b1, w2, b2, g2, be2)


# ---------------------------------------------------------------------------
# Wrapper: one gridless pallas_call; only free contiguous reshapes outside.
# ---------------------------------------------------------------------------
def encoder_forward_fn(src_sbd, params, pe_rows, attn_bias):
    # (S, B, D) -> (S*B, D): contiguous, seq-major token order (bitcast reshape).
    x2 = src_sbd.reshape(T, D)
    out2 = pl.pallas_call(
        encoder_kernel,
        out_shape=jax.ShapeDtypeStruct((T, D), jnp.float32),
        # No grid / default BlockSpecs: whole arrays resident in VMEM for the
        # single invocation (total footprint ~40 KiB, far under any VMEM limit).
    )(x2, pe_rows, attn_bias, *params)
    return out2.reshape(S, B, D)                     # back to PyTorch (S, B, D)


encoder_forward = jax.jit(encoder_forward_fn)


if __name__ == "__main__":
    key = jax.random.PRNGKey(0)
    k_x, k_p = jax.random.split(key)
    src = jax.random.normal(k_x, (S, B, D), jnp.float32)   # (seq, batch, d_model)
    params = init_params(k_p)
    pe_rows = make_pe_rows()
    attn_bias = make_attn_bias()

    out = encoder_forward(src, params, pe_rows, attn_bias)
    jax.block_until_ready(out)
    assert out.shape == (S, B, D) and out.dtype == jnp.float32
    assert bool(jnp.all(jnp.isfinite(out)))
    print("KERNEL_OK")
</pallas_src>

<mosaic_0001>
module attributes {stable_mosaic.version = 11 : i64} {
  func.func @encoder_kernel(%arg0: memref<16x32xf32, #tpu.memory_space<vmem>>, %arg1: memref<16x32xf32, #tpu.memory_space<vmem>>, %arg2: memref<16x16xf32, #tpu.memory_space<vmem>>, %arg3: memref<32x96xf32, #tpu.memory_space<vmem>>, %arg4: memref<1x96xf32, #tpu.memory_space<vmem>>, %arg5: memref<32x32xf32, #tpu.memory_space<vmem>>, %arg6: memref<1x32xf32, #tpu.memory_space<vmem>>, %arg7: memref<1x32xf32, #tpu.memory_space<vmem>>, %arg8: memref<1x32xf32, #tpu.memory_space<vmem>>, %arg9: memref<32x64xf32, #tpu.memory_space<vmem>>, %arg10: memref<1x64xf32, #tpu.memory_space<vmem>>, %arg11: memref<64x32xf32, #tpu.memory_space<vmem>>, %arg12: memref<1x32xf32, #tpu.memory_space<vmem>>, %arg13: memref<1x32xf32, #tpu.memory_space<vmem>>, %arg14: memref<1x32xf32, #tpu.memory_space<vmem>>, %arg15: memref<16x32xf32, #tpu.memory_space<vmem>>) attributes {dimension_semantics = [], scalar_prefetch = 0 : i64, scratch_operands = 0 : i64, tpu.core_type = #tpu.core_type<tc>} {
    %c0 = arith.constant 0 : index
    %c0_0 = arith.constant 0 : index
    %0 = vector.load %arg0[%c0, %c0_0] : memref<16x32xf32, #tpu.memory_space<vmem>>, vector<16x32xf32>
    %c0_1 = arith.constant 0 : index
    %c0_2 = arith.constant 0 : index
    %1 = vector.load %arg1[%c0_1, %c0_2] : memref<16x32xf32, #tpu.memory_space<vmem>>, vector<16x32xf32>
    %2 = arith.addf %0, %1 : vector<16x32xf32>
    %c0_3 = arith.constant 0 : index
    %c0_4 = arith.constant 0 : index
    %3 = vector.load %arg2[%c0_3, %c0_4] : memref<16x16xf32, #tpu.memory_space<vmem>>, vector<16x16xf32>
    %c0_5 = arith.constant 0 : index
    %c0_6 = arith.constant 0 : index
    %4 = vector.load %arg3[%c0_5, %c0_6] : memref<32x96xf32, #tpu.memory_space<vmem>>, vector<32x96xf32>
    %cst = arith.constant dense<0.000000e+00> : vector<16x96xf32>
    %5 = tpu.matmul %2, %4, %cst {dimension_numbers = #tpu.dot_dimension_numbers<[1], [0], [0], [1], [0, 0, 1, 1], [], []>} : vector<16x32xf32>, vector<32x96xf32>, vector<16x96xf32> -> vector<16x96xf32>
    %c0_7 = arith.constant 0 : index
    %c0_8 = arith.constant 0 : index
    %6 = vector.load %arg4[%c0_7, %c0_8] : memref<1x96xf32, #tpu.memory_space<vmem>>, vector<1x96xf32>
    %7 = vector.broadcast %6 : vector<1x96xf32> to vector<16x96xf32>
    %8 = arith.addf %5, %7 : vector<16x96xf32>
    %9 = vector.extract_strided_slice %8 {offsets = [0, 0], sizes = [16, 32], strides = [1, 1]} : vector<16x96xf32> to vector<16x32xf32>
    %cst_9 = arith.constant 0.353553385 : f32
    %10 = vector.broadcast %cst_9 : f32 to vector<16x32xf32>
    %11 = arith.mulf %9, %10 : vector<16x32xf32>
    %12 = vector.extract_strided_slice %8 {offsets = [0, 32], sizes = [16, 32], strides = [1, 1]} : vector<16x96xf32> to vector<16x32xf32>
    %13 = vector.extract_strided_slice %8 {offsets = [0, 64], sizes = [16, 32], strides = [1, 1]} : vector<16x96xf32> to vector<16x32xf32>
    %14 = vector.extract_strided_slice %11 {offsets = [0, 0], sizes = [16, 8], strides = [1, 1]} : vector<16x32xf32> to vector<16x8xf32>
    %15 = vector.extract_strided_slice %12 {offsets = [0, 0], sizes = [16, 8], strides = [1, 1]} : vector<16x32xf32> to vector<16x8xf32>
    %cst_10 = arith.constant dense<0.000000e+00> : vector<16x16xf32>
    %16 = tpu.matmul %14, %15, %cst_10 {dimension_numbers = #tpu.dot_dimension_numbers<[1], [1], [0], [0], [0, 0, 1, 0], [], []>} : vector<16x8xf32>, vector<16x8xf32>, vector<16x16xf32> -> vector<16x16xf32>
    %17 = arith.addf %16, %3 : vector<16x16xf32>
    %cst_11 = arith.constant dense<0xFF800000> : vector<16xf32>
    %18 = vector.multi_reduction <maximumf>, %17, %cst_11 [1] : vector<16x16xf32> to vector<16xf32>
    %19 = vector.shape_cast %18 : vector<16xf32> to vector<16x1xf32>
    %20 = vector.broadcast %19 : vector<16x1xf32> to vector<16x16xf32>
    %21 = arith.subf %17, %20 : vector<16x16xf32>
    %22 = math.exp %21 : vector<16x16xf32>
    %cst_12 = arith.constant dense<0.000000e+00> : vector<16xf32>
    %23 = vector.multi_reduction <add>, %22, %cst_12 [1] : vector<16x16xf32> to vector<16xf32>
    %24 = vector.shape_cast %23 : vector<16xf32> to vector<16x1xf32>
    %25 = tpu.reciprocal %24 {approx = true} : vector<16x1xf32> -> vector<16x1xf32>
    %26 = vector.broadcast %25 : vector<16x1xf32> to vector<16x16xf32>
    %27 = arith.mulf %22, %26 : vector<16x16xf32>
    %28 = vector.extract_strided_slice %13 {offsets = [0, 0], sizes = [16, 8], strides = [1, 1]} : vector<16x32xf32> to vector<16x8xf32>
    %cst_13 = arith.constant dense<0.000000e+00> : vector<16x8xf32>
    %29 = tpu.matmul %27, %28, %cst_13 {dimension_numbers = #tpu.dot_dimension_numbers<[1], [0], [0], [1], [0, 0, 1, 1], [], []>} : vector<16x16xf32>, vector<16x8xf32>, vector<16x8xf32> -> vector<16x8xf32>
    %30 = vector.extract_strided_slice %11 {offsets = [0, 8], sizes = [16, 8], strides = [1, 1]} : vector<16x32xf32> to vector<16x8xf32>
    %31 = vector.extract_strided_slice %12 {offsets = [0, 8], sizes = [16, 8], strides = [1, 1]} : vector<16x32xf32> to vector<16x8xf32>
    %cst_14 = arith.constant dense<0.000000e+00> : vector<16x16xf32>
    %32 = tpu.matmul %30, %31, %cst_14 {dimension_numbers = #tpu.dot_dimension_numbers<[1], [1], [0], [0], [0, 0, 1, 0], [], []>} : vector<16x8xf32>, vector<16x8xf32>, vector<16x16xf32> -> vector<16x16xf32>
    %33 = arith.addf %32, %3 : vector<16x16xf32>
    %cst_15 = arith.constant dense<0xFF800000> : vector<16xf32>
    %34 = vector.multi_reduction <maximumf>, %33, %cst_15 [1] : vector<16x16xf32> to vector<16xf32>
    %35 = vector.shape_cast %34 : vector<16xf32> to vector<16x1xf32>
    %36 = vector.broadcast %35 : vector<16x1xf32> to vector<16x16xf32>
    %37 = arith.subf %33, %36 : vector<16x16xf32>
    %38 = math.exp %37 : vector<16x16xf32>
    %cst_16 = arith.constant dense<0.000000e+00> : vector<16xf32>
    %39 = vector.multi_reduction <add>, %38, %cst_16 [1] : vector<16x16xf32> to vector<16xf32>
    %40 = vector.shape_cast %39 : vector<16xf32> to vector<16x1xf32>
    %41 = tpu.reciprocal %40 {approx = true} : vector<16x1xf32> -> vector<16x1xf32>
    %42 = vector.broadcast %41 : vector<16x1xf32> to vector<16x16xf32>
    %43 = arith.mulf %38, %42 : vector<16x16xf32>
    %44 = vector.extract_strided_slice %13 {offsets = [0, 8], sizes = [16, 8], strides = [1, 1]} : vector<16x32xf32> to vector<16x8xf32>
    %cst_17 = arith.constant dense<0.000000e+00> : vector<16x8xf32>
    %45 = tpu.matmul %43, %44, %cst_17 {dimension_numbers = #tpu.dot_dimension_numbers<[1], [0], [0], [1], [0, 0, 1, 1], [], []>} : vector<16x16xf32>, vector<16x8xf32>, vector<16x8xf32> -> vector<16x8xf32>
    %46 = vector.extract_strided_slice %11 {offsets = [0, 16], sizes = [16, 8], strides = [1, 1]} : vector<16x32xf32> to vector<16x8xf32>
    %47 = vector.extract_strided_slice %12 {offsets = [0, 16], sizes = [16, 8], strides = [1, 1]} : vector<16x32xf32> to vector<16x8xf32>
    %cst_18 = arith.constant dense<0.000000e+00> : vector<16x16xf32>
    %48 = tpu.matmul %46, %47, %cst_18 {dimension_numbers = #tpu.dot_dimension_numbers<[1], [1], [0], [0], [0, 0, 1, 0], [], []>} : vector<16x8xf32>, vector<16x8xf32>, vector<16x16xf32> -> vector<16x16xf32>
    %49 = arith.addf %48, %3 : vector<16x16xf32>
    %cst_19 = arith.constant dense<0xFF800000> : vector<16xf32>
    %50 = vector.multi_reduction <maximumf>, %49, %cst_19 [1] : vector<16x16xf32> to vector<16xf32>
    %51 = vector.shape_cast %50 : vector<16xf32> to vector<16x1xf32>
    %52 = vector.broadcast %51 : vector<16x1xf32> to vector<16x16xf32>
    %53 = arith.subf %49, %52 : vector<16x16xf32>
    %54 = math.exp %53 : vector<16x16xf32>
    %cst_20 = arith.constant dense<0.000000e+00> : vector<16xf32>
    %55 = vector.multi_reduction <add>, %54, %cst_20 [1] : vector<16x16xf32> to vector<16xf32>
    %56 = vector.shape_cast %55 : vector<16xf32> to vector<16x1xf32>
    %57 = tpu.reciprocal %56 {approx = true} : vector<16x1xf32> -> vector<16x1xf32>
    %58 = vector.broadcast %57 : vector<16x1xf32> to vector<16x16xf32>
    %59 = arith.mulf %54, %58 : vector<16x16xf32>
    %60 = vector.extract_strided_slice %13 {offsets = [0, 16], sizes = [16, 8], strides = [1, 1]} : vector<16x32xf32> to vector<16x8xf32>
    %cst_21 = arith.constant dense<0.000000e+00> : vector<16x8xf32>
    %61 = tpu.matmul %59, %60, %cst_21 {dimension_numbers = #tpu.dot_dimension_numbers<[1], [0], [0], [1], [0, 0, 1, 1], [], []>} : vector<16x16xf32>, vector<16x8xf32>, vector<16x8xf32> -> vector<16x8xf32>
    %62 = vector.extract_strided_slice %11 {offsets = [0, 24], sizes = [16, 8], strides = [1, 1]} : vector<16x32xf32> to vector<16x8xf32>
    %63 = vector.extract_strided_slice %12 {offsets = [0, 24], sizes = [16, 8], strides = [1, 1]} : vector<16x32xf32> to vector<16x8xf32>
    %cst_22 = arith.constant dense<0.000000e+00> : vector<16x16xf32>
    %64 = tpu.matmul %62, %63, %cst_22 {dimension_numbers = #tpu.dot_dimension_numbers<[1], [1], [0], [0], [0, 0, 1, 0], [], []>} : vector<16x8xf32>, vector<16x8xf32>, vector<16x16xf32> -> vector<16x16xf32>
    %65 = arith.addf %64, %3 : vector<16x16xf32>
    %cst_23 = arith.constant dense<0xFF800000> : vector<16xf32>
    %66 = vector.multi_reduction <maximumf>, %65, %cst_23 [1] : vector<16x16xf32> to vector<16xf32>
    %67 = vector.shape_cast %66 : vector<16xf32> to vector<16x1xf32>
    %68 = vector.broadcast %67 : vector<16x1xf32> to vector<16x16xf32>
    %69 = arith.subf %65, %68 : vector<16x16xf32>
    %70 = math.exp %69 : vector<16x16xf32>
    %cst_24 = arith.constant dense<0.000000e+00> : vector<16xf32>
    %71 = vector.multi_reduction <add>, %70, %cst_24 [1] : vector<16x16xf32> to vector<16xf32>
    %72 = vector.shape_cast %71 : vector<16xf32> to vector<16x1xf32>
    %73 = tpu.reciprocal %72 {approx = true} : vector<16x1xf32> -> vector<16x1xf32>
    %74 = vector.broadcast %73 : vector<16x1xf32> to vector<16x16xf32>
    %75 = arith.mulf %70, %74 : vector<16x16xf32>
    %76 = vector.extract_strided_slice %13 {offsets = [0, 24], sizes = [16, 8], strides = [1, 1]} : vector<16x32xf32> to vector<16x8xf32>
    %cst_25 = arith.constant dense<0.000000e+00> : vector<16x8xf32>
    %77 = tpu.matmul %75, %76, %cst_25 {dimension_numbers = #tpu.dot_dimension_numbers<[1], [0], [0], [1], [0, 0, 1, 1], [], []>} : vector<16x16xf32>, vector<16x8xf32>, vector<16x8xf32> -> vector<16x8xf32>
    %78 = tpu.concatenate %29, %45, %61, %77 in 1 : vector<16x8xf32>, vector<16x8xf32>, vector<16x8xf32>, vector<16x8xf32> -> vector<16x32xf32>
    %c0_26 = arith.constant 0 : index
    %c0_27 = arith.constant 0 : index
    %79 = vector.load %arg5[%c0_26, %c0_27] : memref<32x32xf32, #tpu.memory_space<vmem>>, vector<32x32xf32>
    %cst_28 = arith.constant dense<0.000000e+00> : vector<16x32xf32>
    %80 = tpu.matmul %78, %79, %cst_28 {dimension_numbers = #tpu.dot_dimension_numbers<[1], [0], [0], [1], [0, 0, 1, 1], [], []>} : vector<16x32xf32>, vector<32x32xf32>, vector<16x32xf32> -> vector<16x32xf32>
    %c0_29 = arith.constant 0 : index
    %c0_30 = arith.constant 0 : index
    %81 = vector.load %arg6[%c0_29, %c0_30] : memref<1x32xf32, #tpu.memory_space<vmem>>, vector<1x32xf32>
    %82 = vector.broadcast %81 : vector<1x32xf32> to vector<16x32xf32>
    %83 = arith.addf %80, %82 : vector<16x32xf32>
    %84 = arith.addf %2, %83 : vector<16x32xf32>
    %cst_31 = arith.constant dense<0.000000e+00> : vector<16xf32>
    %85 = vector.multi_reduction <add>, %84, %cst_31 [1] : vector<16x32xf32> to vector<16xf32>
    %86 = vector.shape_cast %85 : vector<16xf32> to vector<16x1xf32>
    %cst_32 = arith.constant 3.200000e+01 : f32
    %87 = vector.broadcast %cst_32 : f32 to vector<16x1xf32>
    %88 = arith.divf %86, %87 : vector<16x1xf32>
    %89 = vector.broadcast %88 : vector<16x1xf32> to vector<16x32xf32>
    %90 = arith.subf %84, %89 : vector<16x32xf32>
    %91 = arith.mulf %90, %90 : vector<16x32xf32>
    %cst_33 = arith.constant dense<0.000000e+00> : vector<16xf32>
    %92 = vector.multi_reduction <add>, %91, %cst_33 [1] : vector<16x32xf32> to vector<16xf32>
    %93 = vector.shape_cast %92 : vector<16xf32> to vector<16x1xf32>
    %cst_34 = arith.constant 3.200000e+01 : f32
    %94 = vector.broadcast %cst_34 : f32 to vector<16x1xf32>
    %95 = arith.divf %93, %94 : vector<16x1xf32>
    %96 = vector.broadcast %88 : vector<16x1xf32> to vector<16x32xf32>
    %97 = arith.subf %84, %96 : vector<16x32xf32>
    %cst_35 = arith.constant 9.99999974E-6 : f32
    %98 = vector.broadcast %cst_35 : f32 to vector<16x1xf32>
    %99 = arith.addf %95, %98 : vector<16x1xf32>
    %100 = math.rsqrt %99 : vector<16x1xf32>
    %101 = vector.broadcast %100 : vector<16x1xf32> to vector<16x32xf32>
    %102 = arith.mulf %97, %101 : vector<16x32xf32>
    %c0_36 = arith.constant 0 : index
    %c0_37 = arith.constant 0 : index
    %103 = vector.load %arg7[%c0_36, %c0_37] : memref<1x32xf32, #tpu.memory_space<vmem>>, vector<1x32xf32>
    %104 = vector.broadcast %103 : vector<1x32xf32> to vector<16x32xf32>
    %105 = arith.mulf %102, %104 : vector<16x32xf32>
    %c0_38 = arith.constant 0 : index
    %c0_39 = arith.constant 0 : index
    %106 = vector.load %arg8[%c0_38, %c0_39] : memref<1x32xf32, #tpu.memory_space<vmem>>, vector<1x32xf32>
    %107 = vector.broadcast %106 : vector<1x32xf32> to vector<16x32xf32>
    %108 = arith.addf %105, %107 : vector<16x32xf32>
    %c0_40 = arith.constant 0 : index
    %c0_41 = arith.constant 0 : index
    %109 = vector.load %arg9[%c0_40, %c0_41] : memref<32x64xf32, #tpu.memory_space<vmem>>, vector<32x64xf32>
    %cst_42 = arith.constant dense<0.000000e+00> : vector<16x64xf32>
    %110 = tpu.matmul %108, %109, %cst_42 {dimension_numbers = #tpu.dot_dimension_numbers<[1], [0], [0], [1], [0, 0, 1, 1], [], []>} : vector<16x32xf32>, vector<32x64xf32>, vector<16x64xf32> -> vector<16x64xf32>
    %c0_43 = arith.constant 0 : index
    %c0_44 = arith.constant 0 : index
    %111 = vector.load %arg10[%c0_43, %c0_44] : memref<1x64xf32, #tpu.memory_space<vmem>>, vector<1x64xf32>
    %112 = vector.broadcast %111 : vector<1x64xf32> to vector<16x64xf32>
    %113 = arith.addf %110, %112 : vector<16x64xf32>
    %cst_45 = arith.constant 0.000000e+00 : f32
    %114 = vector.broadcast %cst_45 : f32 to vector<16x64xf32>
    %115 = arith.maximumf %113, %114 : vector<16x64xf32>
    %c0_46 = arith.constant 0 : index
    %c0_47 = arith.constant 0 : index
    %116 = vector.load %arg11[%c0_46, %c0_47] : memref<64x32xf32, #tpu.memory_space<vmem>>, vector<64x32xf32>
    %cst_48 = arith.constant dense<0.000000e+00> : vector<16x32xf32>
    %117 = tpu.matmul %115, %116, %cst_48 {dimension_numbers = #tpu.dot_dimension_numbers<[1], [0], [0], [1], [0, 0, 1, 1], [], []>} : vector<16x64xf32>, vector<64x32xf32>, vector<16x32xf32> -> vector<16x32xf32>
    %c0_49 = arith.constant 0 : index
    %c0_50 = arith.constant 0 : index
    %118 = vector.load %arg12[%c0_49, %c0_50] : memref<1x32xf32, #tpu.memory_space<vmem>>, vector<1x32xf32>
    %119 = vector.broadcast %118 : vector<1x32xf32> to vector<16x32xf32>
    %120 = arith.addf %117, %119 : vector<16x32xf32>
    %121 = arith.addf %108, %120 : vector<16x32xf32>
    %cst_51 = arith.constant dense<0.000000e+00> : vector<16xf32>
    %122 = vector.multi_reduction <add>, %121, %cst_51 [1] : vector<16x32xf32> to vector<16xf32>
    %123 = vector.shape_cast %122 : vector<16xf32> to vector<16x1xf32>
    %cst_52 = arith.constant 3.200000e+01 : f32
    %124 = vector.broadcast %cst_52 : f32 to vector<16x1xf32>
    %125 = arith.divf %123, %124 : vector<16x1xf32>
    %126 = vector.broadcast %125 : vector<16x1xf32> to vector<16x32xf32>
    %127 = arith.subf %121, %126 : vector<16x32xf32>
    %128 = arith.mulf %127, %127 : vector<16x32xf32>
    %cst_53 = arith.constant dense<0.000000e+00> : vector<16xf32>
    %129 = vector.multi_reduction <add>, %128, %cst_53 [1] : vector<16x32xf32> to vector<16xf32>
    %130 = vector.shape_cast %129 : vector<16xf32> to vector<16x1xf32>
    %cst_54 = arith.constant 3.200000e+01 : f32
    %131 = vector.broadcast %cst_54 : f32 to vector<16x1xf32>
    %132 = arith.divf %130, %131 : vector<16x1xf32>
    %133 = vector.broadcast %125 : vector<16x1xf32> to vector<16x32xf32>
    %134 = arith.subf %121, %133 : vector<16x32xf32>
    %cst_55 = arith.constant 9.99999974E-6 : f32
    %135 = vector.broadcast %cst_55 : f32 to vector<16x1xf32>
    %136 = arith.addf %132, %135 : vector<16x1xf32>
    %137 = math.rsqrt %136 : vector<16x1xf32>
    %138 = vector.broadcast %137 : vector<16x1xf32> to vector<16x32xf32>
    %139 = arith.mulf %134, %138 : vector<16x32xf32>
    %c0_56 = arith.constant 0 : index
    %c0_57 = arith.constant 0 : index
    %140 = vector.load %arg13[%c0_56, %c0_57] : memref<1x32xf32, #tpu.memory_space<vmem>>, vector<1x32xf32>
    %141 = vector.broadcast %140 : vector<1x32xf32> to vector<16x32xf32>
    %142 = arith.mulf %139, %141 : vector<16x32xf32>
    %c0_58 = arith.constant 0 : index
    %c0_59 = arith.constant 0 : index
    %143 = vector.load %arg14[%c0_58, %c0_59] : memref<1x32xf32, #tpu.memory_space<vmem>>, vector<1x32xf32>
    %144 = vector.broadcast %143 : vector<1x32xf32> to vector<16x32xf32>
    %145 = arith.addf %142, %144 : vector<16x32xf32>
    %c0_60 = arith.constant 0 : index
    %c0_61 = arith.constant 0 : index
    %146 = vector.load %arg3[%c0_60, %c0_61] : memref<32x96xf32, #tpu.memory_space<vmem>>, vector<32x96xf32>
    %cst_62 = arith.constant dense<0.000000e+00> : vector<16x96xf32>
    %147 = tpu.matmul %145, %146, %cst_62 {dimension_numbers = #tpu.dot_dimension_numbers<[1], [0], [0], [1], [0, 0, 1, 1], [], []>} : vector<16x32xf32>, vector<32x96xf32>, vector<16x96xf32> -> vector<16x96xf32>
    %c0_63 = arith.constant 0 : index
    %c0_64 = arith.constant 0 : index
    %148 = vector.load %arg4[%c0_63, %c0_64] : memref<1x96xf32, #tpu.memory_space<vmem>>, vector<1x96xf32>
    %149 = vector.broadcast %148 : vector<1x96xf32> to vector<16x96xf32>
    %150 = arith.addf %147, %149 : vector<16x96xf32>
    %151 = vector.extract_strided_slice %150 {offsets = [0, 0], sizes = [16, 32], strides = [1, 1]} : vector<16x96xf32> to vector<16x32xf32>
    %cst_65 = arith.constant 0.353553385 : f32
    %152 = vector.broadcast %cst_65 : f32 to vector<16x32xf32>
    %153 = arith.mulf %151, %152 : vector<16x32xf32>
    %154 = vector.extract_strided_slice %150 {offsets = [0, 32], sizes = [16, 32], strides = [1, 1]} : vector<16x96xf32> to vector<16x32xf32>
    %155 = vector.extract_strided_slice %150 {offsets = [0, 64], sizes = [16, 32], strides = [1, 1]} : vector<16x96xf32> to vector<16x32xf32>
    %156 = vector.extract_strided_slice %153 {offsets = [0, 0], sizes = [16, 8], strides = [1, 1]} : vector<16x32xf32> to vector<16x8xf32>
    %157 = vector.extract_strided_slice %154 {offsets = [0, 0], sizes = [16, 8], strides = [1, 1]} : vector<16x32xf32> to vector<16x8xf32>
    %cst_66 = arith.constant dense<0.000000e+00> : vector<16x16xf32>
    %158 = tpu.matmul %156, %157, %cst_66 {dimension_numbers = #tpu.dot_dimension_numbers<[1], [1], [0], [0], [0, 0, 1, 0], [], []>} : vector<16x8xf32>, vector<16x8xf32>, vector<16x16xf32> -> vector<16x16xf32>
    %159 = arith.addf %158, %3 : vector<16x16xf32>
    %cst_67 = arith.constant dense<0xFF800000> : vector<16xf32>
    %160 = vector.multi_reduction <maximumf>, %159, %cst_67 [1] : vector<16x16xf32> to vector<16xf32>
    %161 = vector.shape_cast %160 : vector<16xf32> to vector<16x1xf32>
    %162 = vector.broadcast %161 : vector<16x1xf32> to vector<16x16xf32>
    %163 = arith.subf %159, %162 : vector<16x16xf32>
    %164 = math.exp %163 : vector<16x16xf32>
    %cst_68 = arith.constant dense<0.000000e+00> : vector<16xf32>
    %165 = vector.multi_reduction <add>, %164, %cst_68 [1] : vector<16x16xf32> to vector<16xf32>
    %166 = vector.shape_cast %165 : vector<16xf32> to vector<16x1xf32>
    %167 = tpu.reciprocal %166 {approx = true} : vector<16x1xf32> -> vector<16x1xf32>
    %168 = vector.broadcast %167 : vector<16x1xf32> to vector<16x16xf32>
    %169 = arith.mulf %164, %168 : vector<16x16xf32>
    %170 = vector.extract_strided_slice %155 {offsets = [0, 0], sizes = [16, 8], strides = [1, 1]} : vector<16x32xf32> to vector<16x8xf32>
    %cst_69 = arith.constant dense<0.000000e+00> : vector<16x8xf32>
    %171 = tpu.matmul %169, %170, %cst_69 {dimension_numbers = #tpu.dot_dimension_numbers<[1], [0], [0], [1], [0, 0, 1, 1], [], []>} : vector<16x16xf32>, vector<16x8xf32>, vector<16x8xf32> -> vector<16x8xf32>
    %172 = vector.extract_strided_slice %153 {offsets = [0, 8], sizes = [16, 8], strides = [1, 1]} : vector<16x32xf32> to vector<16x8xf32>
    %173 = vector.extract_strided_slice %154 {offsets = [0, 8], sizes = [16, 8], strides = [1, 1]} : vector<16x32xf32> to vector<16x8xf32>
    %cst_70 = arith.constant dense<0.000000e+00> : vector<16x16xf32>
    %174 = tpu.matmul %172, %173, %cst_70 {dimension_numbers = #tpu.dot_dimension_numbers<[1], [1], [0], [0], [0, 0, 1, 0], [], []>} : vector<16x8xf32>, vector<16x8xf32>, vector<16x16xf32> -> vector<16x16xf32>
    %175 = arith.addf %174, %3 : vector<16x16xf32>
    %cst_71 = arith.constant dense<0xFF800000> : vector<16xf32>
    %176 = vector.multi_reduction <maximumf>, %175, %cst_71 [1] : vector<16x16xf32> to vector<16xf32>
    %177 = vector.shape_cast %176 : vector<16xf32> to vector<16x1xf32>
    %178 = vector.broadcast %177 : vector<16x1xf32> to vector<16x16xf32>
    %179 = arith.subf %175, %178 : vector<16x16xf32>
    %180 = math.exp %179 : vector<16x16xf32>
    %cst_72 = arith.constant dense<0.000000e+00> : vector<16xf32>
    %181 = vector.multi_reduction <add>, %180, %cst_72 [1] : vector<16x16xf32> to vector<16xf32>
    %182 = vector.shape_cast %181 : vector<16xf32> to vector<16x1xf32>
    %183 = tpu.reciprocal %182 {approx = true} : vector<16x1xf32> -> vector<16x1xf32>
    %184 = vector.broadcast %183 : vector<16x1xf32> to vector<16x16xf32>
    %185 = arith.mulf %180, %184 : vector<16x16xf32>
    %186 = vector.extract_strided_slice %155 {offsets = [0, 8], sizes = [16, 8], strides = [1, 1]} : vector<16x32xf32> to vector<16x8xf32>
    %cst_73 = arith.constant dense<0.000000e+00> : vector<16x8xf32>
    %187 = tpu.matmul %185, %186, %cst_73 {dimension_numbers = #tpu.dot_dimension_numbers<[1], [0], [0], [1], [0, 0, 1, 1], [], []>} : vector<16x16xf32>, vector<16x8xf32>, vector<16x8xf32> -> vector<16x8xf32>
    %188 = vector.extract_strided_slice %153 {offsets = [0, 16], sizes = [16, 8], strides = [1, 1]} : vector<16x32xf32> to vector<16x8xf32>
    %189 = vector.extract_strided_slice %154 {offsets = [0, 16], sizes = [16, 8], strides = [1, 1]} : vector<16x32xf32> to vector<16x8xf32>
    %cst_74 = arith.constant dense<0.000000e+00> : vector<16x16xf32>
    %190 = tpu.matmul %188, %189, %cst_74 {dimension_numbers = #tpu.dot_dimension_numbers<[1], [1], [0], [0], [0, 0, 1, 0], [], []>} : vector<16x8xf32>, vector<16x8xf32>, vector<16x16xf32> -> vector<16x16xf32>
    %191 = arith.addf %190, %3 : vector<16x16xf32>
    %cst_75 = arith.constant dense<0xFF800000> : vector<16xf32>
    %192 = vector.multi_reduction <maximumf>, %191, %cst_75 [1] : vector<16x16xf32> to vector<16xf32>
    %193 = vector.shape_cast %192 : vector<16xf32> to vector<16x1xf32>
    %194 = vector.broadcast %193 : vector<16x1xf32> to vector<16x16xf32>
    %195 = arith.subf %191, %194 : vector<16x16xf32>
    %196 = math.exp %195 : vector<16x16xf32>
    %cst_76 = arith.constant dense<0.000000e+00> : vector<16xf32>
    %197 = vector.multi_reduction <add>, %196, %cst_76 [1] : vector<16x16xf32> to vector<16xf32>
    %198 = vector.shape_cast %197 : vector<16xf32> to vector<16x1xf32>
    %199 = tpu.reciprocal %198 {approx = true} : vector<16x1xf32> -> vector<16x1xf32>
    %200 = vector.broadcast %199 : vector<16x1xf32> to vector<16x16xf32>
    %201 = arith.mulf %196, %200 : vector<16x16xf32>
    %202 = vector.extract_strided_slice %155 {offsets = [0, 16], sizes = [16, 8], strides = [1, 1]} : vector<16x32xf32> to vector<16x8xf32>
    %cst_77 = arith.constant dense<0.000000e+00> : vector<16x8xf32>
    %203 = tpu.matmul %201, %202, %cst_77 {dimension_numbers = #tpu.dot_dimension_numbers<[1], [0], [0], [1], [0, 0, 1, 1], [], []>} : vector<16x16xf32>, vector<16x8xf32>, vector<16x8xf32> -> vector<16x8xf32>
    %204 = vector.extract_strided_slice %153 {offsets = [0, 24], sizes = [16, 8], strides = [1, 1]} : vector<16x32xf32> to vector<16x8xf32>
    %205 = vector.extract_strided_slice %154 {offsets = [0, 24], sizes = [16, 8], strides = [1, 1]} : vector<16x32xf32> to vector<16x8xf32>
    %cst_78 = arith.constant dense<0.000000e+00> : vector<16x16xf32>
    %206 = tpu.matmul %204, %205, %cst_78 {dimension_numbers = #tpu.dot_dimension_numbers<[1], [1], [0], [0], [0, 0, 1, 0], [], []>} : vector<16x8xf32>, vector<16x8xf32>, vector<16x16xf32> -> vector<16x16xf32>
    %207 = arith.addf %206, %3 : vector<16x16xf32>
    %cst_79 = arith.constant dense<0xFF800000> : vector<16xf32>
    %208 = vector.multi_reduction <maximumf>, %207, %cst_79 [1] : vector<16x16xf32> to vector<16xf32>
    %209 = vector.shape_cast %208 : vector<16xf32> to vector<16x1xf32>
    %210 = vector.broadcast %209 : vector<16x1xf32> to vector<16x16xf32>
    %211 = arith.subf %207, %210 : vector<16x16xf32>
    %212 = math.exp %211 : vector<16x16xf32>
    %cst_80 = arith.constant dense<0.000000e+00> : vector<16xf32>
    %213 = vector.multi_reduction <add>, %212, %cst_80 [1] : vector<16x16xf32> to vector<16xf32>
    %214 = vector.shape_cast %213 : vector<16xf32> to vector<16x1xf32>
    %215 = tpu.reciprocal %214 {approx = true} : vector<16x1xf32> -> vector<16x1xf32>
    %216 = vector.broadcast %215 : vector<16x1xf32> to vector<16x16xf32>
    %217 = arith.mulf %212, %216 : vector<16x16xf32>
    %218 = vector.extract_strided_slice %155 {offsets = [0, 24], sizes = [16, 8], strides = [1, 1]} : vector<16x32xf32> to vector<16x8xf32>
    %cst_81 = arith.constant dense<0.000000e+00> : vector<16x8xf32>
    %219 = tpu.matmul %217, %218, %cst_81 {dimension_numbers = #tpu.dot_dimension_numbers<[1], [0], [0], [1], [0, 0, 1, 1], [], []>} : vector<16x16xf32>, vector<16x8xf32>, vector<16x8xf32> -> vector<16x8xf32>
    %220 = tpu.concatenate %171, %187, %203, %219 in 1 : vector<16x8xf32>, vector<16x8xf32>, vector<16x8xf32>, vector<16x8xf32> -> vector<16x32xf32>
    %c0_82 = arith.constant 0 : index
    %c0_83 = arith.constant 0 : index
    %221 = vector.load %arg5[%c0_82, %c0_83] : memref<32x32xf32, #tpu.memory_space<vmem>>, vector<32x32xf32>
    %cst_84 = arith.constant dense<0.000000e+00> : vector<16x32xf32>
    %222 = tpu.matmul %220, %221, %cst_84 {dimension_numbers = #tpu.dot_dimension_numbers<[1], [0], [0], [1], [0, 0, 1, 1], [], []>} : vector<16x32xf32>, vector<32x32xf32>, vector<16x32xf32> -> vector<16x32xf32>
    %c0_85 = arith.constant 0 : index
    %c0_86 = arith.constant 0 : index
    %223 = vector.load %arg6[%c0_85, %c0_86] : memref<1x32xf32, #tpu.memory_space<vmem>>, vector<1x32xf32>
    %224 = vector.broadcast %223 : vector<1x32xf32> to vector<16x32xf32>
    %225 = arith.addf %222, %224 : vector<16x32xf32>
    %226 = arith.addf %145, %225 : vector<16x32xf32>
    %cst_87 = arith.constant dense<0.000000e+00> : vector<16xf32>
    %227 = vector.multi_reduction <add>, %226, %cst_87 [1] : vector<16x32xf32> to vector<16xf32>
    %228 = vector.shape_cast %227 : vector<16xf32> to vector<16x1xf32>
    %cst_88 = arith.constant 3.200000e+01 : f32
    %229 = vector.broadcast %cst_88 : f32 to vector<16x1xf32>
    %230 = arith.divf %228, %229 : vector<16x1xf32>
    %231 = vector.broadcast %230 : vector<16x1xf32> to vector<16x32xf32>
    %232 = arith.subf %226, %231 : vector<16x32xf32>
    %233 = arith.mulf %232, %232 : vector<16x32xf32>
    %cst_89 = arith.constant dense<0.000000e+00> : vector<16xf32>
    %234 = vector.multi_reduction <add>, %233, %cst_89 [1] : vector<16x32xf32> to vector<16xf32>
    %235 = vector.shape_cast %234 : vector<16xf32> to vector<16x1xf32>
    %cst_90 = arith.constant 3.200000e+01 : f32
    %236 = vector.broadcast %cst_90 : f32 to vector<16x1xf32>
    %237 = arith.divf %235, %236 : vector<16x1xf32>
    %238 = vector.broadcast %230 : vector<16x1xf32> to vector<16x32xf32>
    %239 = arith.subf %226, %238 : vector<16x32xf32>
    %cst_91 = arith.constant 9.99999974E-6 : f32
    %240 = vector.broadcast %cst_91 : f32 to vector<16x1xf32>
    %241 = arith.addf %237, %240 : vector<16x1xf32>
    %242 = math.rsqrt %241 : vector<16x1xf32>
    %243 = vector.broadcast %242 : vector<16x1xf32> to vector<16x32xf32>
    %244 = arith.mulf %239, %243 : vector<16x32xf32>
    %c0_92 = arith.constant 0 : index
    %c0_93 = arith.constant 0 : index
    %245 = vector.load %arg7[%c0_92, %c0_93] : memref<1x32xf32, #tpu.memory_space<vmem>>, vector<1x32xf32>
    %246 = vector.broadcast %245 : vector<1x32xf32> to vector<16x32xf32>
    %247 = arith.mulf %244, %246 : vector<16x32xf32>
    %c0_94 = arith.constant 0 : index
    %c0_95 = arith.constant 0 : index
    %248 = vector.load %arg8[%c0_94, %c0_95] : memref<1x32xf32, #tpu.memory_space<vmem>>, vector<1x32xf32>
    %249 = vector.broadcast %248 : vector<1x32xf32> to vector<16x32xf32>
    %250 = arith.addf %247, %249 : vector<16x32xf32>
    %c0_96 = arith.constant 0 : index
    %c0_97 = arith.constant 0 : index
    %251 = vector.load %arg9[%c0_96, %c0_97] : memref<32x64xf32, #tpu.memory_space<vmem>>, vector<32x64xf32>
    %cst_98 = arith.constant dense<0.000000e+00> : vector<16x64xf32>
    %252 = tpu.matmul %250, %251, %cst_98 {dimension_numbers = #tpu.dot_dimension_numbers<[1], [0], [0], [1], [0, 0, 1, 1], [], []>} : vector<16x32xf32>, vector<32x64xf32>, vector<16x64xf32> -> vector<16x64xf32>
    %c0_99 = arith.constant 0 : index
    %c0_100 = arith.constant 0 : index
    %253 = vector.load %arg10[%c0_99, %c0_100] : memref<1x64xf32, #tpu.memory_space<vmem>>, vector<1x64xf32>
    %254 = vector.broadcast %253 : vector<1x64xf32> to vector<16x64xf32>
    %255 = arith.addf %252, %254 : vector<16x64xf32>
    %cst_101 = arith.constant 0.000000e+00 : f32
    %256 = vector.broadcast %cst_101 : f32 to vector<16x64xf32>
    %257 = arith.maximumf %255, %256 : vector<16x64xf32>
    %c0_102 = arith.constant 0 : index
    %c0_103 = arith.constant 0 : index
    %258 = vector.load %arg11[%c0_102, %c0_103] : memref<64x32xf32, #tpu.memory_space<vmem>>, vector<64x32xf32>
    %cst_104 = arith.constant dense<0.000000e+00> : vector<16x32xf32>
    %259 = tpu.matmul %257, %258, %cst_104 {dimension_numbers = #tpu.dot_dimension_numbers<[1], [0], [0], [1], [0, 0, 1, 1], [], []>} : vector<16x64xf32>, vector<64x32xf32>, vector<16x32xf32> -> vector<16x32xf32>
    %c0_105 = arith.constant 0 : index
    %c0_106 = arith.constant 0 : index
    %260 = vector.load %arg12[%c0_105, %c0_106] : memref<1x32xf32, #tpu.memory_space<vmem>>, vector<1x32xf32>
    %261 = vector.broadcast %260 : vector<1x32xf32> to vector<16x32xf32>
    %262 = arith.addf %259, %261 : vector<16x32xf32>
    %263 = arith.addf %250, %262 : vector<16x32xf32>
    %cst_107 = arith.constant dense<0.000000e+00> : vector<16xf32>
    %264 = vector.multi_reduction <add>, %263, %cst_107 [1] : vector<16x32xf32> to vector<16xf32>
    %265 = vector.shape_cast %264 : vector<16xf32> to vector<16x1xf32>
    %cst_108 = arith.constant 3.200000e+01 : f32
    %266 = vector.broadcast %cst_108 : f32 to vector<16x1xf32>
    %267 = arith.divf %265, %266 : vector<16x1xf32>
    %268 = vector.broadcast %267 : vector<16x1xf32> to vector<16x32xf32>
    %269 = arith.subf %263, %268 : vector<16x32xf32>
    %270 = arith.mulf %269, %269 : vector<16x32xf32>
    %cst_109 = arith.constant dense<0.000000e+00> : vector<16xf32>
    %271 = vector.multi_reduction <add>, %270, %cst_109 [1] : vector<16x32xf32> to vector<16xf32>
    %272 = vector.shape_cast %271 : vector<16xf32> to vector<16x1xf32>
    %cst_110 = arith.constant 3.200000e+01 : f32
    %273 = vector.broadcast %cst_110 : f32 to vector<16x1xf32>
    %274 = arith.divf %272, %273 : vector<16x1xf32>
    %275 = vector.broadcast %267 : vector<16x1xf32> to vector<16x32xf32>
    %276 = arith.subf %263, %275 : vector<16x32xf32>
    %cst_111 = arith.constant 9.99999974E-6 : f32
    %277 = vector.broadcast %cst_111 : f32 to vector<16x1xf32>
    %278 = arith.addf %274, %277 : vector<16x1xf32>
    %279 = math.rsqrt %278 : vector<16x1xf32>
    %280 = vector.broadcast %279 : vector<16x1xf32> to vector<16x32xf32>
    %281 = arith.mulf %276, %280 : vector<16x32xf32>
    %c0_112 = arith.constant 0 : index
    %c0_113 = arith.constant 0 : index
    %282 = vector.load %arg13[%c0_112, %c0_113] : memref<1x32xf32, #tpu.memory_space<vmem>>, vector<1x32xf32>
    %283 = vector.broadcast %282 : vector<1x32xf32> to vector<16x32xf32>
    %284 = arith.mulf %281, %283 : vector<16x32xf32>
    %c0_114 = arith.constant 0 : index
    %c0_115 = arith.constant 0 : index
    %285 = vector.load %arg14[%c0_114, %c0_115] : memref<1x32xf32, #tpu.memory_space<vmem>>, vector<1x32xf32>
    %286 = vector.broadcast %285 : vector<1x32xf32> to vector<16x32xf32>
    %287 = arith.addf %284, %286 : vector<16x32xf32>
    %c0_116 = arith.constant 0 : index
    %c0_117 = arith.constant 0 : index
    %288 = vector.load %arg15[%c0_116, %c0_117] : memref<16x32xf32, #tpu.memory_space<vmem>>, vector<16x32xf32>
    tpu.vector_store %arg15[%c0_116, %c0_117], %287 {strides = array<i32>} : memref<16x32xf32, #tpu.memory_space<vmem>>, vector<16x32xf32>,
    return
  }
}

</mosaic_0001>

<bundles_post_ra>
// kernel: encoder_forward_fn.1
= control target key start
LH: loop header
LB: loop body
LE: loop exit
PB: predicated region body
PF: predicated region fallthrough
CT: control target
= control target key end

     0   :  { %20 = vsyncpa [#allocation3], 0  ;;  %s4078_s0 = inlined_call_operand.hbm [shape: f32[16,32], index: 0, kind: input, shape index: {}]   ;;  %s4079_s1 = inlined_call_operand.vmem [shape: f32[16,32], index: 1, kind: input, shape index: {}]   ;;  %s4080_s2 = inlined_call_operand.hbm [shape: f32[16,16], index: 2, kind: input, shape index: {}]   ;;  %s4081_s3 = inlined_call_operand.vmem [shape: f32[32,96], index: 3, kind: input, shape index: {}]   ;;  %s4082_s4 = inlined_call_operand.hbm [shape: f32[1,96], index: 4, kind: input, shape index: {}]   ;;  %s4083_s5 = inlined_call_operand.vmem [shape: f32[32,32], index: 5, kind: input, shape index: {}]   ;;  %s4084_s6 = inlined_call_operand.hbm [shape: f32[1,32], index: 6, kind: input, shape index: {}]   ;;  %s4085_s7 = inlined_call_operand.hbm [shape: f32[1,32], index: 7, kind: input, shape index: {}]   ;;  %s4086_s8 = inlined_call_operand.hbm [shape: f32[1,32], index: 8, kind: input, shape index: {}]   ;;  %s4087_s9 = inlined_call_operand.vmem [shape: f32[32,64], index: 9, kind: input, shape index: {}]   ;;  %s4088_s10 = inlined_call_operand.hbm [shape: f32[1,64], index: 10, kind: input, shape index: {}]   ;;  %s4089_s11 = inlined_call_operand.vmem [shape: f32[64,32], index: 11, kind: input, shape index: {}]   ;;  %s4090_s12 = inlined_call_operand.vmem [shape: f32[1,32], index: 12, kind: input, shape index: {}]   ;;  %s4091_s13 = inlined_call_operand.vmem [shape: f32[1,32], index: 13, kind: input, shape index: {}]   ;;  %s4092_s14 = inlined_call_operand.vmem [shape: f32[1,32], index: 14, kind: input, shape index: {}]   ;;  %s4093_s15 = inlined_call_operand.hbm [shape: f32[16,32], index: 15, kind: output, shape index: {}]  }
   0x1   :  { %21 = vsyncpa [#allocation6], 0 }
   0x2   :  { %22 = vsyncpa [#allocation9], 0 }
   0x3   :  { %23 = vsyncpa [#allocation12], 0 }
   0x4   :  { %24 = vsyncpa [#allocation4], 0  ;;  %s3375_s18 = smov [#allocation5]   ;;  %s3376_s20 = smov [#allocation8]  }
   0x5   :  { %s44_s19 = sshll.u32 %s3375_s18, 4  ;;  %s71_s21 = sshll.u32 %s3376_s20, 4  ;;  %s45_s19 = int_to_ptr.vmem [resolvable:$true] %s44_s19  ;;  %s72_s21 = int_to_ptr.vmem [resolvable:$true] %s71_s21 }
   0x6   :  { %s3213_s22 = scalar_lea.vmem %s45_s19, 256  ;;  %p3218_p1 = scmp.lt.s32.totalorder %s45_s19, %s45_s19 }
   0x7   :  { %p3214_p0 = scmp.ne.s32.totalorder %s45_s19, %s3213_s22  ;;  %p3219_p2 = scmp.lt.s32.totalorder %s3213_s22, %s3213_s22 }
   0x9   :  { %p3220_p3 = por %p3219_p2, %p3218_p1 }
   0xb   :  { %p3221_p4 = pnand %p3220_p3, %p3214_p0 }
   0xd   :  { %3224 = shalt.err (!%p3221_p4)
}
   0xe   :  { %s3377_s23 = smov 128   ;;  %s3378_s24 = smov 8  }
   0xf   :  { %50 = dma.hbm_to_vmem [thread:$0]  %s4080_s2, 256, %s45_s19, [#allocation6], %s3377_s23, %s3377_s23, %s3378_s24  }
  0x10   :  { %s3233_s27 = scalar_lea.vmem %s72_s21, 16  ;;  %s3237_s28 = scalar_lea.vmem %s72_s21, 32 }
  0x11   :  { %p3234_p5 = scmp.ne.s32.totalorder %s72_s21, %s3233_s27  ;;  %p3238_p6 = scmp.lt.s32.totalorder %s72_s21, %s72_s21 }
  0x12   :  { %p3239_p7 = scmp.lt.s32.totalorder %s3237_s28, %s3233_s27 }
  0x14   :  { %p3240_p8 = por %p3239_p7, %p3238_p6 }
  0x16   :  { %p3241_p9 = pnand %p3240_p8, %p3234_p5 }
  0x18   :  { %3244 = shalt.err (!%p3241_p9)
}
  0x19   :  { %74 = dma.hbm_to_vmem [thread:$0]  %s4084_s6, 16, %s72_s21, [#allocation9]  }
  0x1a   :  { %s3379_s16 = smov [#allocation11]   ;;  %s3380_s18 = smov [#allocation2]  }
  0x1b   :  { %s91_s17 = sshll.u32 %s3379_s16, 4  ;;  %s30_s20 = sshll.u32 %s3380_s18, 4  ;;  %s92_s17 = int_to_ptr.vmem [resolvable:$true] %s91_s17  ;;  %s31_s20 = int_to_ptr.vmem [resolvable:$true] %s30_s20 }
  0x1c   :  { %s3253_s22 = scalar_lea.vmem %s92_s17, 16  ;;  %s3257_s2 = scalar_lea.vmem %s92_s17, 32 }
  0x1d   :  { %p3254_p10 = scmp.ne.s32.totalorder %s92_s17, %s3253_s22  ;;  %p3258_p11 = scmp.lt.s32.totalorder %s92_s17, %s92_s17 }
  0x1e   :  { %p3259_p12 = scmp.lt.s32.totalorder %s3257_s2, %s3253_s22 }
  0x20   :  { %p3260_p13 = por %p3259_p12, %p3258_p11 }
  0x22   :  { %p3261_p0 = pnand %p3260_p13, %p3254_p10 }
  0x24   :  { %3264 = shalt.err (!%p3261_p0)
}
  0x25   :  { %94 = dma.hbm_to_vmem [thread:$0]  %s4086_s8, 16, %s92_s17, [#allocation12]  }
  0x26   :  { %s3273_s26 = scalar_lea.vmem %s31_s20, 256  ;;  %p3278_p2 = scmp.lt.s32.totalorder %s31_s20, %s31_s20 }
  0x27   :  { %p3274_p1 = scmp.ne.s32.totalorder %s31_s20, %s3273_s26  ;;  %p3279_p3 = scmp.lt.s32.totalorder %s3273_s26, %s3273_s26 }
  0x29   :  { %p3280_p4 = por %p3279_p3, %p3278_p2 }
  0x2b   :  { %p3281_p5 = pnand %p3280_p4, %p3274_p1 }
  0x2d   :  { %3284 = shalt.err (!%p3281_p5)
}
  0x2e   :  { %36 = dma.hbm_to_vmem [thread:$0]  %s4078_s0, 256, %s31_s20, [#allocation3], %s3377_s23, %s3377_s23, %s3378_s24  }
  0x2f   :  { %s3381_s27 = smov [#allocation7]   ;;  %s3382_s29 = smov [#allocation10]  }
  0x30   :  { %s59_s28 = sshll.u32 %s3381_s27, 4  ;;  %s81_s30 = sshll.u32 %s3382_s29, 4  ;;  %s60_s28 = int_to_ptr.vmem [resolvable:$true] %s59_s28  ;;  %s82_s30 = int_to_ptr.vmem [resolvable:$true] %s81_s30 }
  0x31   :  { %s3293_s8 = scalar_lea.vmem %s60_s28, 16  ;;  %s3297_s16 = scalar_lea.vmem %s60_s28, 32 }
  0x32   :  { %p3294_p6 = scmp.ne.s32.totalorder %s60_s28, %s3293_s8  ;;  %p3298_p7 = scmp.lt.s32.totalorder %s60_s28, %s60_s28 }
  0x33   :  { %p3299_p8 = scmp.lt.s32.totalorder %s3297_s16, %s3293_s8 }
  0x35   :  { %p3300_p9 = por %p3299_p8, %p3298_p7 }
  0x37   :  { %p3301_p10 = pnand %p3300_p9, %p3294_p6 }
  0x39   :  { %3304 = shalt.err (!%p3301_p10)
}
  0x3a   :  { %62 = dma.hbm_to_vmem [thread:$0]  %s4082_s4, 16, %s60_s28, [#allocation6]  }
  0x3b   :  { %s3313_s22 = scalar_lea.vmem %s82_s30, 16  ;;  %s3317_s0 = scalar_lea.vmem %s82_s30, 32 }
  0x3c   :  { %p3314_p11 = scmp.ne.s32.totalorder %s82_s30, %s3313_s22  ;;  %p3318_p12 = scmp.lt.s32.totalorder %s82_s30, %s82_s30 }
  0x3d   :  { %p3319_p13 = scmp.lt.s32.totalorder %s3317_s0, %s3313_s22 }
  0x3f   :  { %p3320_p0 = por %p3319_p13, %p3318_p12 }
  0x41   :  { %p3321_p1 = pnand %p3320_p0, %p3314_p11 }
  0x43   :  { %3324 = shalt.err (!%p3321_p1)
}
  0x44   :  { %84 = dma.hbm_to_vmem [thread:$0]  %s4085_s7, 16, %s82_s30, [#allocation9]  }
  0x45   :  { %s3383_s19 = smov [#allocation13]  }
  0x46   :  { %s103_s25 = sshll.u32 %s3383_s19, 4  ;;  %s104_s25 = int_to_ptr.vmem [resolvable:$true] %s103_s25 }
  0x47   :  { %s3333_s26 = scalar_lea.vmem %s104_s25, 16  ;;  %s3337_s6 = scalar_lea.vmem %s104_s25, 32 }
  0x48   :  { %p3334_p2 = scmp.ne.s32.totalorder %s104_s25, %s3333_s26  ;;  %p3338_p3 = scmp.lt.s32.totalorder %s104_s25, %s104_s25 }
  0x49   :  { %p3339_p4 = scmp.lt.s32.totalorder %s3337_s6, %s3333_s26 }
  0x4b   :  { %p3340_p5 = por %p3339_p4, %p3338_p3 }
  0x4d   :  { %p3341_p6 = pnand %p3340_p5, %p3334_p2 }
  0x4f   :  { %3344 = shalt.err (!%p3341_p6)
}
  0x50   :  { %106 = dma.hbm_to_vmem [thread:$0]  %s4088_s10, 16, %s104_s25, [#allocation12]  }
  0x51   :  { %3365 = dma.done.wait [#allocation3], 256  }
  0x52   :  { %3366 = vsyncadd [#allocation3], 4294967040 }
  0x53   :  { %3367 = dma.done.wait [#allocation6], 272  }
  0x54   :  { %3368 = vsyncadd [#allocation6], 4294967024 }
  0x55   :  { %3369 = dma.done.wait [#allocation9], 32  }
  0x56   :  { %3370 = vsyncadd [#allocation9], 4294967264 }
  0x57   :  { %3371 = dma.done.wait [#allocation12], 32  }
  0x58   :  { %3372 = vsyncadd [#allocation12], 4294967264  ;;  %v3508_v0 = vld [vmem:[%s4081_s3 + $0x18] sm:$0xff]  ;;  %v3513_v1 = vld [vmem:[%s4081_s3 + $0x10] sm:$0xff]  ;;  %vm155_vm0 = vcmask 261120   ;;  %vm245_vm1 = vcmask 64512  }
  0x59   :  { %2884 = vmatprep.subr.mxu1 %v3508_v0  ;;  %v136_v2 = vld [vmem:[#allocation2] sm:$0xff]  ;;  %v3523_v4 = vld [vmem:[%s4081_s3 + $0x8] sm:$0xff]  ;;  %s3386_s20 = smov 120   ;;  %v3587_v23 = vld [vmem:[#allocation5 + $0x8] sm:$0xff]  ;;  %vm331_vm2 = vcmask 130048   ;;  %s3387_s2 = smov 64  }
  0x5a   :  { %v138_v3 = vld [vmem:[%s4079_s1] sm:$0xff]  ;;  %2885 = vmatpush3.msra.mxu1 %v3508_v0  ;;  %v137_v6 = vld [vmem:[#allocation2 + $0x8] sm:$0xff]  ;;  %v3589_v25 = vld [vmem:[#allocation5] sm:$0xff]  ;;  %s3388_s19 = smov 56   ;;  %s3389_s25 = smov 80   ;;  %vm1069_vm3 = vcmask 195584  }
  0x5b   :  { %v3525_v5 = vadd.f32 %v138_v3, %v136_v2  ;;  %v139_v7 = vld [vmem:[%s4079_s1 + $0x8] sm:$0xff]  ;;  %2886 = vmatprep.subr.mxu1 %v3513_v1  ;;  %v3535_v8 = vld [vmem:[%s4081_s3] sm:$0xff]  ;;  %s3384_s1 = smov 88   ;;  %s3385_s3 = smov 96   ;;  %vm1320_vm4 = vcmask 523264  }
  0x5c   :  { %2887 = vmatpush3.msra.mxu1 %v3513_v1  ;;  %v3540_v9 = vadd.f32 %v139_v7, %v137_v6  ;;  %v3547_v10 = vld [vmem:[#allocation7] ss:$0 sm:$0xff]  ;;  %s3390_s26 = smov 112   ;;  %s3391_s6 = smov 48  }
  0x5d   :  { %2892 = vmatprep.mubr.msk.f32.mxu1 %vm155_vm0, %v3525_v5  ;;  %2888 = vmatprep.subr.mxu1 %v3523_v4  ;;  %s3392_s4 = smov 72   ;;  %s3393_s21 = smov 104  }
  0x5e   :  { %2889 = vmatpush3.msra.mxu1 %v3523_v4  ;;  %s3394_s7 = smov 40   ;;  %s3395_s27 = smov 16  }
  0x5f   :  { %2890 = vmatprep.subr.mxu1 %v3535_v8  ;;  %s3396_s22 = smov 24  }
  0x60   :  { %2891 = vmatpush3.msra.mxu1 %v3535_v8 }
  0x61   :  { %2893 = vmatmul.mubr.msk.f32.vlgmr.msra.gmra.mxu1 %vm155_vm0, %v3540_v9 }
 0x121   :  { %v2894_v11 = vpop.f32.mrf.mxu1 }
 0x122   :  { %v3550_v12 = vadd.f32 %v2894_v11, %v3547_v10 }
 0x123   :  { %v228_v13 = vpop.f32.mrf.mxu1 }
 0x124   :  { %v3553_v14 = vadd.f32 %v3547_v10, %v228_v13  ;;  %447 = vrot.lane.b32.xlu1 %v3550_v12, %s3384_s1  ;;  %243 = vrot.lane.b32.xlu0 %v3550_v12, %s3385_s3  ;;  %v3569_v16 = vmul.f32 0.35355338, %v3550_v12 }
 0x126   :  { %v3560_v15 = vmul.f32 0.35355338, %v3553_v14 }
 0x128   :  { %445 = vrot.lane.b32.xlu1 %v3553_v14, %s3384_s1  ;;  %241 = vrot.lane.b32.xlu0 %v3553_v14, %s3385_s3 }
 0x129   :  { %2899 = vmatprep.mubr.msk.f32.mxu1 %vm245_vm1, %v3560_v15 }
 0x12c   :  { %443 = vrot.lane.b32.xlu1 %v3569_v16, %s3386_s20  ;;  %441 = vrot.lane.b32.xlu0 %v3560_v15, %s3386_s20 }
 0x196   :  { %v244_v17 = vpop.permute.xlu0 %243  ;;  %v448_v18 = vpop.permute.xlu1 %447 }
 0x197   :  { %2895 = vmatprep.subr.msk.mxu1 %vm245_vm1, %v244_v17 }
 0x198   :  { %2896 = vmatpush3.xpose.msk.msra.mxu1 %vm245_vm1, %v244_v17 }
 0x19a   :  { %v242_v19 = vpop.permute.xlu0 %241  ;;  %v446_v21 = vpop.permute.xlu1 %445 }
 0x19b   :  { %2897 = vmatprep.subr.msk.mxu1 %vm245_vm1, %v242_v19 }
 0x19c   :  { %2898 = vmatpush3.xpose.msk.msra.mxu1 %vm245_vm1, %v242_v19 }
 0x19d   :  { %2909 = vmatprep.subr.msk.mxu1 %vm245_vm1, %v448_v18 }
 0x19e   :  { %v442_v20 = vpop.permute.xlu0 %441  ;;  %v444_v22 = vpop.permute.xlu1 %443 }
 0x19f   :  { %2900 = vmatmul.mubr.msk.f32.vlgmr.msra.gmra.mxu1 %vm245_vm1, %v3569_v16 }
 0x1a0   :  { %2910 = vmatpush3.xpose.msk.msra.mxu1 %vm245_vm1, %v448_v18  ;;  %2913 = vmatprep.mubr.msk.f32.mxu1 %vm245_vm1, %v442_v20 }
 0x1a1   :  { %2911 = vmatprep.subr.msk.mxu1 %vm245_vm1, %v446_v21 }
 0x1a4   :  { %2912 = vmatpush3.xpose.msk.msra.mxu1 %vm245_vm1, %v446_v21 }
 0x1a7   :  { %2914 = vmatmul.mubr.msk.f32.vlgmr.msra.gmra.mxu1 %vm245_vm1, %v444_v22 }
 0x25f   :  { %v2901_v24 = vpop.f32.mrf.mxu1 }
 0x260   :  { %v328_v26 = vadd.f32 %v2901_v24, %v3587_v23 }
 0x261   :  { %v322_v27 = vpop.f32.mrf.mxu1 }
 0x262   :  { %v323_v28 = vadd.f32 %v322_v27, %v3589_v25  ;;  %v335_v29 = vsel %vm331_vm2, %v328_v26, -inf }
 0x263   :  { %336 = vmax.xlane.f32.xlu1 %v335_v29 }
 0x264   :  { %v332_v30 = vsel %vm331_vm2, %v323_v28, -inf }
 0x265   :  { %333 = vmax.xlane.f32.xlu0 %v332_v30 }
 0x267   :  { %v2915_v31 = vpop.f32.mrf.mxu1 }
 0x268   :  { %v529_v34 = vadd.f32 %v2915_v31, %v3587_v23 }
 0x269   :  { %v523_v32 = vpop.f32.mrf.mxu1 }
 0x26a   :  { %v524_v33 = vadd.f32 %v523_v32, %v3589_v25  ;;  %v535_v36 = vsel %vm331_vm2, %v529_v34, -inf }
 0x26c   :  { %v532_v35 = vsel %vm331_vm2, %v524_v33, -inf }
 0x26d   :  { %533 = vmax.xlane.f32.xlu0 %v532_v35 }
 0x271   :  { %536 = vmax.xlane.f32.xlu0 %v535_v36 }
 0x274   :  { %356 = vrot.lane.b32.xlu1 %v3550_v12, %s3387_s2 }
 0x278   :  { %556 = vrot.lane.b32.xlu1 %v3550_v12, %s3388_s19 }
 0x27c   :  { %554 = vrot.lane.b32.xlu1 %v3553_v14, %s3388_s19 }
 0x287   :  { %354 = vrot.lane.b32.xlu0 %v3553_v14, %s3387_s2 }
 0x2ec   :  { %v337_v37 = vpop.xlane.xlu1 %336 }
 0x2ed   :  { %v339_v38 = vsub.f32 %v328_v26, %v337_v37 }
 0x2ee   :  { %v334_v39 = vpop.xlane.xlu0 %333 }
 0x2ef   :  { %v342_v40 = vmul.f32 1.442695, %v339_v38  ;;  %v338_v41 = vsub.f32 %v323_v28, %v334_v39 }
 0x2f0   :  { %v357_v42 = vpop.permute.xlu1 %356 }
 0x2f1   :  { %3123 = vpow2.f32 %v342_v40  ;;  %v340_v43 = vmul.f32 1.442695, %v338_v41  ;;  %2902 = vmatprep.subr.mxu0 %v357_v42 }
 0x2f2   :  { %2903 = vmatpush3.msra.mxu0 %v357_v42 }
 0x2f3   :  { %3125 = vpow2.f32 %v340_v43 }
 0x2f4   :  { %v557_v52 = vpop.permute.xlu1 %556 }
 0x2f6   :  { %v534_v44 = vpop.xlane.xlu0 %533 }
 0x2f7   :  { %v538_v56 = vsub.f32 %v524_v33, %v534_v44 }
 0x2f8   :  { %v555_v60 = vpop.permute.xlu1 %554 }
 0x2f9   :  { %v540_v57 = vmul.f32 1.442695, %v538_v56 }
 0x2fa   :  { %v537_v45 = vpop.xlane.xlu0 %536 }
 0x2fb   :  { %v539_v46 = vsub.f32 %v529_v34, %v537_v45 }
 0x2fd   :  { %v542_v47 = vmul.f32 1.442695, %v539_v46 }
 0x2fe   :  { %v3124_v48 = vpop.eup %3123  ;;  %v355_v49 = vpop.permute.xlu0 %354 }
 0x2ff   :  { %3127 = vpow2.f32 %v542_v47  ;;  %2904 = vmatprep.subr.mxu0 %v355_v49  ;;  %v347_v50 = vsel %vm331_vm2, %v3124_v48, 0.0 }
 0x300   :  { %v3126_v51 = vpop.eup %3125  ;;  %348 = vadd.xlane.f32.xlu0 %v347_v50  ;;  %2905 = vmatpush3.msra.mxu0 %v355_v49  ;;  %3129 = vpow2.f32 %v540_v57 }
 0x301   :  { %2916 = vmatprep.subr.mxu0 %v557_v52  ;;  %v344_v53 = vsel %vm331_vm2, %v3126_v51, 0.0 }
 0x302   :  { %345 = vadd.xlane.f32.xlu1 %v344_v53 }
 0x30c   :  { %v3128_v54 = vpop.eup %3127 }
 0x30d   :  { %v547_v55 = vsel %vm331_vm2, %v3128_v54, 0.0  ;;  %v3130_v58 = vpop.eup %3129 }
 0x30e   :  { %548 = vadd.xlane.f32.xlu0 %v547_v55  ;;  %v544_v59 = vsel %vm331_vm2, %v3130_v58, 0.0 }
 0x313   :  { %645 = vrot.lane.b32.xlu1 %v3553_v14, %s3389_s25 }
 0x324   :  { %647 = vrot.lane.b32.xlu0 %v3550_v12, %s3389_s25 }
 0x328   :  { %641 = vrot.lane.b32.xlu0 %v3560_v15, %s3390_s26 }
 0x337   :  { %545 = vadd.xlane.f32.xlu1 %v544_v59 }
 0x348   :  { %643 = vrot.lane.b32.xlu1 %v3569_v16, %s3390_s26 }
 0x389   :  { %v349_v61 = vpop.xlane.xlu0 %348 }
 0x38a   :  { %3131 = vrcp.f32 %v349_v61 }
 0x38b   :  { %v346_v62 = vpop.xlane.xlu1 %345 }
 0x38c   :  { %3133 = vrcp.f32 %v346_v62 }
 0x38f   :  { %v646_v13 = vpop.permute.xlu1 %645 }
 0x397   :  { %v3132_v63 = vpop.eup %3131  ;;  %v549_v3 = vpop.xlane.xlu0 %548 }
 0x398   :  { %v353_v7 = vmul.f32 %v3132_v63, %v3124_v48  ;;  %3135 = vrcp.f32 %v549_v3 }
 0x399   :  { %v3134_v2 = vpop.eup %3133 }
 0x39a   :  { %v352_v6 = vmul.f32 %v3134_v2, %v3126_v51 }
 0x39b   :  { %v648_v11 = vpop.permute.xlu0 %647 }
 0x39c   :  { %2906 = vmatprep.mubr.msk.f32.mxu0 %vm331_vm2, %v352_v6 }
 0x39d   :  { %2907 = vmatmul.mubr.msk.f32.vlgmr.msra.gmra.mxu0 %vm331_vm2, %v353_v7 }
 0x39e   :  { %2917 = vmatpush3.msra.mxu0 %v557_v52 }
 0x39f   :  { %2918 = vmatprep.subr.mxu0 %v555_v60  ;;  %v642_v22 = vpop.permute.xlu0 %641 }
 0x3a0   :  { %2919 = vmatpush3.msra.mxu0 %v555_v60 }
 0x3a1   :  { %2923 = vmatprep.subr.msk.mxu0 %vm245_vm1, %v648_v11 }
 0x3a5   :  { %v3136_v18 = vpop.eup %3135 }
 0x3a6   :  { %v553_v21 = vmul.f32 %v3136_v18, %v3128_v54 }
 0x3c0   :  { %v546_v17 = vpop.xlane.xlu1 %545 }
 0x3c1   :  { %3137 = vrcp.f32 %v546_v17 }
 0x3c4   :  { %v644_v24 = vpop.permute.xlu1 %643 }
 0x3ce   :  { %v3138_v19 = vpop.eup %3137 }
 0x3cf   :  { %v552_v20 = vmul.f32 %v3138_v19, %v3130_v58 }
 0x3d1   :  { %2920 = vmatprep.mubr.msk.f32.mxu0 %vm331_vm2, %v552_v20 }
 0x3d2   :  { %2921 = vmatmul.mubr.msk.f32.vlgmr.msra.gmra.mxu0 %vm331_vm2, %v553_v21 }
 0x3d3   :  { %2924 = vmatpush3.xpose.msk.msra.mxu0 %vm245_vm1, %v648_v11  ;;  %2927 = vmatprep.mubr.msk.f32.mxu0 %vm245_vm1, %v642_v22 }
 0x3d4   :  { %2925 = vmatprep.subr.msk.mxu0 %vm245_vm1, %v646_v13 }
 0x3d7   :  { %2926 = vmatpush3.xpose.msk.msra.mxu0 %vm245_vm1, %v646_v13 }
 0x3da   :  { %2928 = vmatmul.mubr.msk.f32.vlgmr.msra.gmra.mxu0 %vm245_vm1, %v644_v24 }
 0x45d   :  { %v3629_v26 = vpop.f32.mrf.mxu0 }
 0x45f   :  { %v3631_v27 = vpop.f32.mrf.mxu0 }
 0x492   :  { %v3633_v28 = vpop.f32.mrf.mxu0 }
 0x494   :  { %v3635_v29 = vpop.f32.mrf.mxu0 }
 0x49a   :  { %v2929_v30 = vpop.f32.mrf.mxu0 }
 0x49b   :  { %v729_v31 = vadd.f32 %v2929_v30, %v3587_v23 }
 0x49c   :  { %v723_v32 = vpop.f32.mrf.mxu0 }
 0x49d   :  { %v724_v33 = vadd.f32 %v723_v32, %v3589_v25  ;;  %v735_v34 = vsel %vm331_vm2, %v729_v31, -inf  ;;  %v3689_v32 = vld [vmem:[%s4083_s5 + $0x10] sm:$0xff] }
 0x49e   :  { %736 = vmax.xlane.f32.xlu1 %v735_v34  ;;  %v3705_v34 = vld [vmem:[%s4083_s5] sm:$0xff] }
 0x49f   :  { %v732_v35 = vsel %vm331_vm2, %v724_v33, -inf }
 0x4a0   :  { %733 = vmax.xlane.f32.xlu0 %v732_v35 }
 0x4af   :  { %756 = vrot.lane.b32.xlu1 %v3550_v12, %s3391_s6 }
 0x4b3   :  { %847 = vrot.lane.b32.xlu1 %v3550_v12, %s3392_s4 }
 0x4b7   :  { %845 = vrot.lane.b32.xlu1 %v3553_v14, %s3392_s4 }
 0x4bb   :  { %843 = vrot.lane.b32.xlu1 %v3569_v16, %s3393_s21 }
 0x527   :  { %v737_v36 = vpop.xlane.xlu1 %736 }
 0x528   :  { %v739_v37 = vsub.f32 %v729_v31, %v737_v36 }
 0x529   :  { %v734_v38 = vpop.xlane.xlu0 %733 }
 0x52a   :  { %v742_v39 = vmul.f32 1.442695, %v739_v37  ;;  %v738_v40 = vsub.f32 %v724_v33, %v734_v38  ;;  %v3698_v33 = vld [vmem:[%s4083_s5 + $0x8] sm:$0xff] }
 0x52b   :  { %v757_v41 = vpop.permute.xlu1 %756 }
 0x52c   :  { %3139 = vpow2.f32 %v742_v39  ;;  %v740_v42 = vmul.f32 1.442695, %v738_v40  ;;  %2930 = vmatprep.subr.mxu1 %v757_v41 }
 0x52d   :  { %2931 = vmatpush3.msra.mxu1 %v757_v41 }
 0x52e   :  { %3141 = vpow2.f32 %v740_v42 }
 0x52f   :  { %v848_v49 = vpop.permute.xlu1 %847 }
 0x539   :  { %v3140_v43 = vpop.eup %3139 }
 0x53a   :  { %v747_v44 = vsel %vm331_vm2, %v3140_v43, 0.0 }
 0x53b   :  { %v3142_v45 = vpop.eup %3141  ;;  %748 = vadd.xlane.f32.xlu0 %v747_v44 }
 0x53c   :  { %v744_v46 = vsel %vm331_vm2, %v3142_v45, 0.0 }
 0x53f   :  { %745 = vadd.xlane.f32.xlu0 %v744_v46 }
 0x555   :  { %754 = vrot.lane.b32.xlu0 %v3553_v14, %s3391_s6 }
 0x559   :  { %841 = vrot.lane.b32.xlu0 %v3560_v15, %s3393_s21  ;;  %v846_v15 = vpop.permute.xlu1 %845 }
 0x55d   :  { %v844_v55 = vpop.permute.xlu1 %843 }
 0x5c4   :  { %v749_v16 = vpop.xlane.xlu0 %748 }
 0x5c5   :  { %3143 = vrcp.f32 %v749_v16 }
 0x5c8   :  { %v746_v47 = vpop.xlane.xlu0 %745 }
 0x5c9   :  { %3145 = vrcp.f32 %v746_v47 }
 0x5cc   :  { %v755_v48 = vpop.permute.xlu0 %754 }
 0x5cd   :  { %2932 = vmatprep.subr.mxu1 %v755_v48 }
 0x5ce   :  { %2933 = vmatpush3.msra.mxu1 %v755_v48  ;;  %v3721_v48 = vld [vmem:[#allocation8] ss:$0 sm:$0xff] }
 0x5cf   :  { %2937 = vmatprep.subr.msk.mxu1 %vm245_vm1, %v848_v49 }
 0x5d0   :  { %v842_v54 = vpop.permute.xlu0 %841 }
 0x5d2   :  { %v3144_v50 = vpop.eup %3143 }
 0x5d3   :  { %v753_v53 = vmul.f32 %v3144_v50, %v3140_v43 }
 0x5d6   :  { %v3146_v51 = vpop.eup %3145 }
 0x5d7   :  { %v752_v52 = vmul.f32 %v3146_v51, %v3142_v45 }
 0x5d9   :  { %2934 = vmatprep.mubr.msk.f32.mxu1 %vm331_vm2, %v752_v52 }
 0x5da   :  { %2935 = vmatmul.mubr.msk.f32.vlgmr.msra.gmra.mxu1 %vm331_vm2, %v753_v53 }
 0x5db   :  { %2938 = vmatpush3.xpose.msk.msra.mxu1 %vm245_vm1, %v848_v49  ;;  %2941 = vmatprep.mubr.msk.f32.mxu1 %vm245_vm1, %v842_v54 }
 0x5dc   :  { %2939 = vmatprep.subr.msk.mxu1 %vm245_vm1, %v846_v15 }
 0x5df   :  { %2940 = vmatpush3.xpose.msk.msra.mxu1 %vm245_vm1, %v846_v15 }
 0x5e2   :  { %2942 = vmatmul.mubr.msk.f32.vlgmr.msra.gmra.mxu1 %vm245_vm1, %v844_v55 }
 0x69a   :  { %v2936_v56 = vpop.f32.mrf.mxu1 }
 0x69c   :  { %v832_v57 = vpop.f32.mrf.mxu1 }
 0x6a2   :  { %v2943_v58 = vpop.f32.mrf.mxu1 }
 0x6a3   :  { %v929_v59 = vadd.f32 %v2943_v58, %v3587_v23 }
 0x6a4   :  { %v923_v60 = vpop.f32.mrf.mxu1 }
 0x6a5   :  { %v924_v61 = vadd.f32 %v923_v60, %v3589_v25  ;;  %v935_v62 = vsel %vm331_vm2, %v929_v59, -inf }
 0x6a6   :  { %936 = vmax.xlane.f32.xlu1 %v935_v62 }
 0x6a7   :  { %v932_v63 = vsel %vm331_vm2, %v924_v61, -inf }
 0x6a8   :  { %933 = vmax.xlane.f32.xlu0 %v932_v63  ;;  %v3741_v63 = vld [vmem:[%s4087_s9 + $0x10] sm:$0xff] }
 0x6b7   :  { %956 = vrot.lane.b32.xlu1 %v3550_v12, %s3394_s7 }
 0x6bb   :  { %1043 = vrot.lane.b32.xlu1 %v3635_v29, %s3378_s24 }
 0x6bf   :  { %1045 = vrot.lane.b32.xlu1 %v3633_v28, %s3378_s24 }
 0x6c3   :  { %1053 = vrot.lane.b32.xlu1 %v2936_v56, %s3395_s27 }
 0x72f   :  { %v937_v2 = vpop.xlane.xlu1 %936 }
 0x730   :  { %v939_v3 = vsub.f32 %v929_v59, %v937_v2  ;;  %v3747_v2 = vld [vmem:[%s4087_s9 + $0x8] sm:$0xff] }
 0x731   :  { %v934_v6 = vpop.xlane.xlu0 %933 }
 0x732   :  { %v942_v7 = vmul.f32 1.442695, %v939_v3  ;;  %v938_v11 = vsub.f32 %v924_v61, %v934_v6  ;;  %v3754_v3 = vld [vmem:[%s4087_s9] sm:$0xff]  ;;  %v3762_v6 = vld [vmem:[%s4089_s11 + $0x38] sm:$0xff] }
 0x733   :  { %v957_v13 = vpop.permute.xlu1 %956 }
 0x734   :  { %3147 = vpow2.f32 %v942_v7  ;;  %v940_v17 = vmul.f32 1.442695, %v938_v11  ;;  %2944 = vmatprep.subr.mxu0 %v957_v13  ;;  %v3767_v7 = vld [vmem:[%s4089_s11 + $0x30] sm:$0xff]  ;;  %v3775_v11 = vld [vmem:[%s4089_s11 + $0x28] sm:$0xff] }
 0x735   :  { %2945 = vmatpush3.msra.mxu0 %v957_v13  ;;  %v3782_v13 = vld [vmem:[%s4089_s11 + $0x20] sm:$0xff] }
 0x736   :  { %3149 = vpow2.f32 %v940_v17 }
 0x737   :  { %v1044_v37 = vpop.permute.xlu1 %1043 }
 0x738   :  { %v1065_v41 = vsel %vm245_vm1, %v3631_v27, %v1044_v37 }
 0x73b   :  { %v1046_v38 = vpop.permute.xlu1 %1045 }
 0x73c   :  { %v1066_v43 = vsel %vm245_vm1, %v3629_v26, %v1046_v38 }
 0x73f   :  { %v1054_v39 = vpop.permute.xlu1 %1053 }
 0x740   :  { %v1068_v46 = vsel %vm331_vm2, %v1066_v43, %v1054_v39  ;;  %v3808_v39 = vld [vmem:[%s4089_s11 + $0x18] sm:$0xff] }
 0x741   :  { %v3148_v12 = vpop.eup %3147 }
 0x742   :  { %v947_v18 = vsel %vm331_vm2, %v3148_v12, 0.0 }
 0x743   :  { %v3150_v19 = vpop.eup %3149  ;;  %948 = vadd.xlane.f32.xlu0 %v947_v18 }
 0x744   :  { %v944_v20 = vsel %vm331_vm2, %v3150_v19, 0.0 }
 0x747   :  { %945 = vadd.xlane.f32.xlu0 %v944_v20 }
 0x75d   :  { %954 = vrot.lane.b32.xlu0 %v3553_v14, %s3394_s7  ;;  %v3684_v14 = vld [vmem:[%s4083_s5 + $0x18] sm:$0xff] }
 0x761   :  { %1051 = vrot.lane.b32.xlu0 %v832_v57, %s3395_s27 }
 0x7cc   :  { %v949_v21 = vpop.xlane.xlu0 %948 }
 0x7cd   :  { %3151 = vrcp.f32 %v949_v21 }
 0x7d0   :  { %v946_v22 = vpop.xlane.xlu0 %945 }
 0x7d1   :  { %3153 = vrcp.f32 %v946_v22 }
 0x7d4   :  { %v955_v24 = vpop.permute.xlu0 %954 }
 0x7d5   :  { %2946 = vmatprep.subr.mxu0 %v955_v24 }
 0x7d6   :  { %2947 = vmatpush3.msra.mxu0 %v955_v24  ;;  %v3788_v24 = vld [vmem:[#allocation10] ss:$0 sm:$0xff] }
 0x7d7   :  { %2951 = vmatprep.subr.mxu0 %v3684_v14 }
 0x7d8   :  { %v1052_v40 = vpop.permute.xlu0 %1051 }
 0x7d9   :  { %v1067_v44 = vsel %vm331_vm2, %v1065_v41, %v1052_v40 }
 0x7da   :  { %v3152_v28 = vpop.eup %3151 }
 0x7db   :  { %v953_v31 = vmul.f32 %v3152_v28, %v3148_v12 }
 0x7de   :  { %v3154_v29 = vpop.eup %3153 }
 0x7df   :  { %v952_v30 = vmul.f32 %v3154_v29, %v3150_v19  ;;  %v3790_v29 = vld [vmem:[#allocation11] ss:$0 sm:$0xff] }
 0x7e1   :  { %2948 = vmatprep.mubr.msk.f32.mxu0 %vm331_vm2, %v952_v30 }
 0x7e2   :  { %2949 = vmatmul.mubr.msk.f32.vlgmr.msra.gmra.mxu0 %vm331_vm2, %v953_v31 }
 0x7e3   :  { %2952 = vmatpush3.msra.mxu0 %v3684_v14 }
 0x7e4   :  { %2953 = vmatprep.subr.mxu0 %v3689_v32 }
 0x7e5   :  { %2954 = vmatpush3.msra.mxu0 %v3689_v32 }
 0x7e6   :  { %2955 = vmatprep.subr.mxu0 %v3698_v33 }
 0x7e7   :  { %2956 = vmatpush3.msra.mxu0 %v3698_v33 }
 0x7e8   :  { %2957 = vmatprep.subr.mxu0 %v3705_v34 }
 0x7e9   :  { %2958 = vmatpush3.msra.mxu0 %v3705_v34 }
 0x7ea   :  { %2973 = vmatprep.subr.mxu0 %v3762_v6 }
 0x8a2   :  { %v2950_v35 = vpop.f32.mrf.mxu0 }
 0x8a3   :  { %1061 = vrot.lane.b32.xlu1 %v2950_v35, %s3396_s22 }
 0x8a4   :  { %v1032_v36 = vpop.f32.mrf.mxu0 }
 0x8a5   :  { %1059 = vrot.lane.b32.xlu0 %v1032_v36, %s3396_s22 }
 0x915   :  { %v1062_v42 = vpop.permute.xlu1 %1061 }
 0x916   :  { %v1071_v47 = vsel %vm1069_vm3, %v1068_v46, %v1062_v42  ;;  %v3842_v46 = vld [vmem:[%s4090_s12] ss:$0 sm:$0xff] }
 0x917   :  { %v1060_v45 = vpop.permute.xlu0 %1059 }
 0x918   :  { %v1070_v16 = vsel %vm1069_vm3, %v1067_v44, %v1060_v45 }
 0x919   :  { %2959 = vmatprep.mubr.msk.f32.mxu0 %vm155_vm0, %v1070_v16 }
 0x91a   :  { %2960 = vmatmul.mubr.msk.f32.vlgmr.msra.gmra.mxu0 %vm155_vm0, %v1071_v47 }
 0x91b   :  { %2974 = vmatpush3.msra.mxu0 %v3762_v6 }
 0x91c   :  { %2975 = vmatprep.subr.mxu0 %v3767_v7 }
 0x91d   :  { %2976 = vmatpush3.msra.mxu0 %v3767_v7 }
 0x91e   :  { %2977 = vmatprep.subr.mxu0 %v3775_v11 }
 0x91f   :  { %2978 = vmatpush3.msra.mxu0 %v3775_v11 }
 0x920   :  { %2979 = vmatprep.subr.mxu0 %v3782_v13 }
 0x921   :  { %2980 = vmatpush3.msra.mxu0 %v3782_v13 }
 0x922   :  { %2981 = vmatprep.subr.mxu0 %v3808_v39 }
 0x923   :  { %2982 = vmatpush3.msra.mxu0 %v3808_v39 }
 0x9da   :  { %v2961_v27 = vpop.f32.mrf.mxu0 }
 0x9db   :  { %v1161_v49 = vadd.f32 %v2961_v27, %v3721_v48 }
 0x9dc   :  { %v1155_v50 = vpop.f32.mrf.mxu0 }
 0x9dd   :  { %v1156_v26 = vadd.f32 %v3721_v48, %v1155_v50  ;;  %v1165_v51 = vadd.f32 %v1161_v49, %v3540_v9 }
 0x9df   :  { %v1169_v52 = vsel %vm155_vm0, %v1165_v51, 0.0  ;;  %v1164_v53 = vadd.f32 %v1156_v26, %v3525_v5  ;;  %v3734_v5 = vld [vmem:[%s4087_s9 + $0x18] sm:$0xff] }
 0x9e0   :  { %1170 = vadd.xlane.f32.xlu1 %v1169_v52  ;;  %2962 = vmatprep.subr.mxu1 %v3734_v5 }
 0x9e1   :  { %v1166_v54 = vsel %vm155_vm0, %v1164_v53, 0.0  ;;  %2963 = vmatpush3.msra.mxu1 %v3734_v5 }
 0x9e2   :  { %1167 = vadd.xlane.f32.xlu0 %v1166_v54  ;;  %2964 = vmatprep.subr.mxu1 %v3741_v63 }
 0x9e3   :  { %2965 = vmatpush3.msra.mxu1 %v3741_v63 }
 0x9e4   :  { %2966 = vmatprep.subr.mxu1 %v3747_v2 }
 0x9e5   :  { %2967 = vmatpush3.msra.mxu1 %v3747_v2 }
 0x9e6   :  { %2968 = vmatprep.subr.mxu1 %v3754_v3 }
 0x9e7   :  { %2969 = vmatpush3.msra.mxu1 %v3754_v3 }
 0x9e8   :  { %2992 = vmatprep.subr.mxu1 %v3508_v0 }
 0xa69   :  { %v1171_v15 = vpop.xlane.xlu1 %1170 }
 0xa6a   :  { %v1174_v55 = vmul.f32 0.03125, %v1171_v15 }
 0xa6b   :  { %v1168_v56 = vpop.xlane.xlu0 %1167 }
 0xa6c   :  { %v1173_v57 = vmul.f32 0.03125, %v1168_v56  ;;  %v1176_v58 = vsub.f32 %v1165_v51, %v1174_v55 }
 0xa6e   :  { %v1175_v59 = vsub.f32 %v1164_v53, %v1173_v57  ;;  %v1178_v62 = vmul.f32 %v1176_v58, %v1176_v58 }
 0xa70   :  { %v1177_v60 = vmul.f32 %v1175_v59, %v1175_v59  ;;  %v1182_v9 = vsel %vm155_vm0, %v1178_v62, 0.0 }
 0xa72   :  { %v1179_v61 = vsel %vm155_vm0, %v1177_v60, 0.0 }
 0xa73   :  { %1180 = vadd.xlane.f32.xlu0 %v1179_v61 }
 0xa77   :  { %1183 = vadd.xlane.f32.xlu0 %v1182_v9 }
 0xafc   :  { %v1181_v17 = vpop.xlane.xlu0 %1180 }
 0xafd   :  { %v1185_v12 = vmul.f32 0.03125, %v1181_v17 }
 0xaff   :  { %v1187_v18 = vadd.f32 1e-05, %v1185_v12 }
 0xb00   :  { %v1184_v19 = vpop.xlane.xlu0 %1183 }
 0xb01   :  { %3155 = vrsqrt.f32 %v1187_v18  ;;  %v1186_v20 = vmul.f32 0.03125, %v1184_v19 }
 0xb03   :  { %v1188_v21 = vadd.f32 1e-05, %v1186_v20 }
 0xb05   :  { %3157 = vrsqrt.f32 %v1188_v21 }
 0xb0e   :  { %v3156_v22 = vpop.eup %3155 }
 0xb0f   :  { %v1191_v28 = vmul.f32 %v3156_v22, %v1175_v59  ;;  %v3853_v22 = vld [vmem:[%s4091_s13] ss:$0 sm:$0xff]  ;;  %s3397_s13 = smov [#allocation14]  }
 0xb11   :  { %v1200_v30 = vmul.f32 %v3788_v24, %v1191_v28 }
 0xb12   :  { %v3158_v31 = vpop.eup %3157 }
 0xb13   :  { %v1192_v35 = vmul.f32 %v3158_v31, %v1176_v58  ;;  %v1209_v36 = vadd.f32 %v3790_v29, %v1200_v30 }
 0xb15   :  { %2970 = vmatprep.mubr.msk.f32.mxu1 %vm155_vm0, %v1209_v36  ;;  %v1201_v37 = vmul.f32 %v3788_v24, %v1192_v35 }
 0xb17   :  { %v1210_v38 = vadd.f32 %v3790_v29, %v1201_v37 }
 0xb19   :  { %2971 = vmatmul.mubr.msk.f32.vlgmr.msra.gmra.mxu1 %vm155_vm0, %v1210_v38 }
 0xb1a   :  { %2993 = vmatpush3.msra.mxu1 %v3508_v0  ;;  %v3815_v0 = vld [vmem:[%s4089_s11 + $0x10] sm:$0xff] }
 0xb1b   :  { %2994 = vmatprep.subr.mxu1 %v3513_v1  ;;  %2983 = vmatprep.subr.mxu0 %v3815_v0 }
 0xb1c   :  { %2995 = vmatpush3.msra.mxu1 %v3513_v1  ;;  %2984 = vmatpush3.msra.mxu0 %v3815_v0  ;;  %v3822_v1 = vld [vmem:[%s4089_s11 + $0x8] sm:$0xff] }
 0xb1d   :  { %2996 = vmatprep.subr.mxu1 %v3523_v4  ;;  %2985 = vmatprep.subr.mxu0 %v3822_v1 }
 0xb1e   :  { %2997 = vmatpush3.msra.mxu1 %v3523_v4  ;;  %2986 = vmatpush3.msra.mxu0 %v3822_v1  ;;  %v3829_v4 = vld [vmem:[%s4089_s11] sm:$0xff] }
 0xb1f   :  { %2998 = vmatprep.subr.mxu1 %v3535_v8  ;;  %2987 = vmatprep.subr.mxu0 %v3829_v4 }
 0xb20   :  { %2999 = vmatpush3.msra.mxu1 %v3535_v8  ;;  %2988 = vmatpush3.msra.mxu0 %v3829_v4  ;;  %v3833_v8 = vld [vmem:[#allocation13] ss:$0 sm:$0xff] }
 0xbd9   :  { %v2972_v40 = vpop.f32.mrf.mxu1 }
 0xbda   :  { %v1300_v41 = vadd.f32 %v2972_v40, %v3833_v8 }
 0xbdb   :  { %v1294_v42 = vpop.f32.mrf.mxu1 }
 0xbdc   :  { %v1295_v43 = vadd.f32 %v3833_v8, %v1294_v42  ;;  %v1304_v45 = vmax.f32 %v1300_v41, 0.0 }
 0xbde   :  { %v1303_v44 = vmax.f32 %v1295_v43, 0.0 }
 0xbe0   :  { %2989 = vmatprep.mubr.msk.f32.mxu0 %vm1320_vm4, %v1303_v44 }
 0xbe1   :  { %2990 = vmatmul.mubr.msk.f32.vlgmr.msra.gmra.mxu0 %vm1320_vm4, %v1304_v45 }
 0xca1   :  { %v2991_v16 = vpop.f32.mrf.mxu0 }
 0xca2   :  { %v1399_v47 = vadd.f32 %v2991_v16, %v3842_v46 }
 0xca3   :  { %v1393_v27 = vpop.f32.mrf.mxu0 }
 0xca4   :  { %v1394_v49 = vadd.f32 %v3842_v46, %v1393_v27  ;;  %v1403_v50 = vadd.f32 %v1399_v47, %v1210_v38 }
 0xca6   :  { %v1407_v26 = vsel %vm155_vm0, %v1403_v50, 0.0  ;;  %v1402_v51 = vadd.f32 %v1394_v49, %v1209_v36  ;;  %v3860_v36 = vld [vmem:[%s4092_s14] ss:$0 sm:$0xff]  ;;  %s2677_s14 = sshll.u32 %s3397_s13, 4  ;;  %s2678_s14 = int_to_ptr.vmem [resolvable:$true] %s2677_s14 }
 0xca7   :  { %1408 = vadd.xlane.f32.xlu0 %v1407_v26  ;;  %p3350_p8 = scmp.lt.s32.totalorder %s2678_s14, %s2678_s14 }
 0xca8   :  { %v1404_v52 = vsel %vm155_vm0, %v1402_v51, 0.0 }
 0xca9   :  { %1405 = vadd.xlane.f32.xlu1 %v1404_v52 }
 0xd30   :  { %v1409_v53 = vpop.xlane.xlu0 %1408 }
 0xd31   :  { %v1411_v54 = vmul.f32 0.03125, %v1409_v53 }
 0xd32   :  { %v1406_v15 = vpop.xlane.xlu1 %1405 }
 0xd33   :  { %v1413_v55 = vsub.f32 %v1403_v50, %v1411_v54  ;;  %v1410_v56 = vmul.f32 0.03125, %v1406_v15 }
 0xd35   :  { %v1412_v57 = vsub.f32 %v1402_v51, %v1410_v56  ;;  %v1415_v58 = vmul.f32 %v1413_v55, %v1413_v55 }
 0xd37   :  { %v1419_v59 = vsel %vm155_vm0, %v1415_v58, 0.0  ;;  %v1414_v60 = vmul.f32 %v1412_v57, %v1412_v57 }
 0xd38   :  { %1420 = vadd.xlane.f32.xlu0 %v1419_v59 }
 0xd39   :  { %v1416_v61 = vsel %vm155_vm0, %v1414_v60, 0.0 }
 0xd3a   :  { %1417 = vadd.xlane.f32.xlu1 %v1416_v61 }
 0xdc1   :  { %v1421_v62 = vpop.xlane.xlu0 %1420 }
 0xdc2   :  { %v1423_v9 = vmul.f32 0.03125, %v1421_v62 }
 0xdc3   :  { %v1418_v17 = vpop.xlane.xlu1 %1417 }
 0xdc4   :  { %v1425_v12 = vadd.f32 1e-05, %v1423_v9  ;;  %v1422_v18 = vmul.f32 0.03125, %v1418_v17 }
 0xdc6   :  { %3159 = vrsqrt.f32 %v1425_v12  ;;  %v1424_v19 = vadd.f32 1e-05, %v1422_v18 }
 0xdc8   :  { %3161 = vrsqrt.f32 %v1424_v19 }
 0xdd3   :  { %v3160_v20 = vpop.eup %3159 }
 0xdd4   :  { %v1429_v21 = vmul.f32 %v3160_v20, %v1413_v55 }
 0xdd5   :  { %v3162_v28 = vpop.eup %3161 }
 0xdd6   :  { %v1428_v30 = vmul.f32 %v3162_v28, %v1412_v57  ;;  %v1438_v31 = vmul.f32 %v3853_v22, %v1429_v21 }
 0xdd8   :  { %v1437_v35 = vmul.f32 %v3853_v22, %v1428_v30  ;;  %v3866_v38 = vadd.f32 %v3860_v36, %v1438_v31 }
 0xdda   :  { %v3863_v37 = vadd.f32 %v3860_v36, %v1437_v35 }
 0xddc   :  { %3000 = vmatprep.mubr.msk.f32.mxu1 %vm155_vm0, %v3863_v37 }
 0xddd   :  { %3001 = vmatmul.mubr.msk.f32.vlgmr.msra.gmra.mxu1 %vm155_vm0, %v3866_v38 }
 0xe9d   :  { %v3002_v40 = vpop.f32.mrf.mxu1 }
 0xe9e   :  { %v3873_v41 = vadd.f32 %v3002_v40, %v3547_v10 }
 0xe9f   :  { %v1520_v42 = vpop.f32.mrf.mxu1 }
 0xea0   :  { %v3876_v43 = vadd.f32 %v3547_v10, %v1520_v42  ;;  %1535 = vrot.lane.b32.xlu1 %v3873_v41, %s3385_s3  ;;  %v3894_v10 = vmul.f32 0.35355338, %v3873_v41 }
 0xea2   :  { %1533 = vrot.lane.b32.xlu0 %v3876_v43, %s3385_s3  ;;  %v3883_v44 = vmul.f32 0.35355338, %v3876_v43 }
 0xea4   :  { %1737 = vrot.lane.b32.xlu1 %v3873_v41, %s3384_s1  ;;  %3007 = vmatprep.mubr.msk.f32.mxu1 %vm245_vm1, %v3883_v44 }
 0xea6   :  { %1731 = vrot.lane.b32.xlu0 %v3883_v44, %s3386_s20 }
 0xea8   :  { %1735 = vrot.lane.b32.xlu1 %v3876_v43, %s3384_s1  ;;  %s3345_s1 = scalar_lea.vmem %s2678_s14, 256 }
 0xea9   :  { %p3346_p7 = scmp.ne.s32.totalorder %s2678_s14, %s3345_s1  ;;  %p3351_p9 = scmp.lt.s32.totalorder %s3345_s1, %s3345_s1 }
 0xeab   :  { %p3352_p10 = por %p3351_p9, %p3350_p8 }
 0xeac   :  { %1733 = vrot.lane.b32.xlu1 %v3894_v10, %s3386_s20 }
 0xead   :  { %p3353_p11 = pnand %p3352_p10, %p3346_p7 }
 0xf12   :  { %v1536_v45 = vpop.permute.xlu1 %1535 }
 0xf13   :  { %3003 = vmatprep.subr.msk.mxu1 %vm245_vm1, %v1536_v45 }
 0xf14   :  { %3004 = vmatpush3.xpose.msk.msra.mxu1 %vm245_vm1, %v1536_v45  ;;  %v1534_v16 = vpop.permute.xlu0 %1533 }
 0xf15   :  { %3005 = vmatprep.subr.msk.mxu1 %vm245_vm1, %v1534_v16 }
 0xf16   :  { %v1738_v47 = vpop.permute.xlu1 %1737 }
 0xf18   :  { %3006 = vmatpush3.xpose.msk.msra.mxu1 %vm245_vm1, %v1534_v16  ;;  %v1732_v27 = vpop.permute.xlu0 %1731 }
 0xf19   :  { %3017 = vmatprep.subr.msk.mxu1 %vm245_vm1, %v1738_v47 }
 0xf1a   :  { %v1736_v49 = vpop.permute.xlu1 %1735 }
 0xf1b   :  { %3008 = vmatmul.mubr.msk.f32.vlgmr.msra.gmra.mxu1 %vm245_vm1, %v3894_v10 }
 0xf1c   :  { %3018 = vmatpush3.xpose.msk.msra.mxu1 %vm245_vm1, %v1738_v47  ;;  %3021 = vmatprep.mubr.msk.f32.mxu1 %vm245_vm1, %v1732_v27 }
 0xf1d   :  { %3019 = vmatprep.subr.msk.mxu1 %vm245_vm1, %v1736_v49 }
 0xf1e   :  { %v1734_v50 = vpop.permute.xlu1 %1733 }
 0xf20   :  { %3020 = vmatpush3.xpose.msk.msra.mxu1 %vm245_vm1, %v1736_v49 }
 0xf23   :  { %3022 = vmatmul.mubr.msk.f32.vlgmr.msra.gmra.mxu1 %vm245_vm1, %v1734_v50 }
 0xfdb   :  { %v3009_v26 = vpop.f32.mrf.mxu1 }
 0xfdc   :  { %v1619_v51 = vadd.f32 %v3009_v26, %v3587_v23 }
 0xfdd   :  { %v1613_v52 = vpop.f32.mrf.mxu1 }
 0xfde   :  { %v1614_v53 = vadd.f32 %v1613_v52, %v3589_v25  ;;  %v1625_v54 = vsel %vm331_vm2, %v1619_v51, -inf }
 0xfdf   :  { %1626 = vmax.xlane.f32.xlu1 %v1625_v54 }
 0xfe0   :  { %v1622_v15 = vsel %vm331_vm2, %v1614_v53, -inf }
 0xfe1   :  { %1623 = vmax.xlane.f32.xlu0 %v1622_v15 }
 0xfe3   :  { %v3023_v55 = vpop.f32.mrf.mxu1 }
 0xfe4   :  { %v1819_v58 = vadd.f32 %v3023_v55, %v3587_v23 }
 0xfe5   :  { %v1813_v56 = vpop.f32.mrf.mxu1 }
 0xfe6   :  { %v1814_v57 = vadd.f32 %v1813_v56, %v3589_v25  ;;  %v1825_v60 = vsel %vm331_vm2, %v1819_v58, -inf }
 0xfe8   :  { %v1822_v59 = vsel %vm331_vm2, %v1814_v57, -inf }
 0xfe9   :  { %1823 = vmax.xlane.f32.xlu0 %v1822_v59 }
 0xfed   :  { %1826 = vmax.xlane.f32.xlu0 %v1825_v60 }
 0xff0   :  { %1646 = vrot.lane.b32.xlu1 %v3873_v41, %s3387_s2 }
 0xff4   :  { %1846 = vrot.lane.b32.xlu1 %v3873_v41, %s3388_s19 }
 0xff8   :  { %1844 = vrot.lane.b32.xlu1 %v3876_v43, %s3388_s19 }
0x1003   :  { %1644 = vrot.lane.b32.xlu0 %v3876_v43, %s3387_s2 }
0x1068   :  { %v1627_v61 = vpop.xlane.xlu1 %1626 }
0x1069   :  { %v1629_v62 = vsub.f32 %v1619_v51, %v1627_v61 }
0x106a   :  { %v1624_v9 = vpop.xlane.xlu0 %1623 }
0x106b   :  { %v1632_v17 = vmul.f32 1.442695, %v1629_v62  ;;  %v1628_v12 = vsub.f32 %v1614_v53, %v1624_v9 }
0x106c   :  { %v1647_v18 = vpop.permute.xlu1 %1646 }
0x106d   :  { %3163 = vpow2.f32 %v1632_v17  ;;  %v1630_v19 = vmul.f32 1.442695, %v1628_v12  ;;  %3010 = vmatprep.subr.mxu0 %v1647_v18 }
0x106e   :  { %3011 = vmatpush3.msra.mxu0 %v1647_v18 }
0x106f   :  { %3165 = vpow2.f32 %v1630_v19 }
0x1070   :  { %v1847_v45 = vpop.permute.xlu1 %1846 }
0x1072   :  { %v1824_v20 = vpop.xlane.xlu0 %1823 }
0x1073   :  { %v1828_v49 = vsub.f32 %v1814_v57, %v1824_v20 }
0x1074   :  { %v1845_v52 = vpop.permute.xlu1 %1844 }
0x1075   :  { %v1830_v50 = vmul.f32 1.442695, %v1828_v49 }
0x1076   :  { %v1827_v21 = vpop.xlane.xlu0 %1826 }
0x1077   :  { %v1829_v28 = vsub.f32 %v1819_v58, %v1827_v21 }
0x1079   :  { %v1832_v30 = vmul.f32 1.442695, %v1829_v28 }
0x107a   :  { %v3164_v31 = vpop.eup %3163  ;;  %v1645_v35 = vpop.permute.xlu0 %1644 }
0x107b   :  { %3167 = vpow2.f32 %v1832_v30  ;;  %3012 = vmatprep.subr.mxu0 %v1645_v35  ;;  %v1637_v40 = vsel %vm331_vm2, %v3164_v31, 0.0 }
0x107c   :  { %v3166_v42 = vpop.eup %3165  ;;  %1638 = vadd.xlane.f32.xlu0 %v1637_v40  ;;  %3013 = vmatpush3.msra.mxu0 %v1645_v35  ;;  %3169 = vpow2.f32 %v1830_v50 }
0x107d   :  { %3024 = vmatprep.subr.mxu0 %v1847_v45  ;;  %v1634_v16 = vsel %vm331_vm2, %v3166_v42, 0.0 }
0x107e   :  { %1635 = vadd.xlane.f32.xlu1 %v1634_v16 }
0x1088   :  { %v3168_v47 = vpop.eup %3167 }
0x1089   :  { %v1837_v27 = vsel %vm331_vm2, %v3168_v47, 0.0  ;;  %v3170_v26 = vpop.eup %3169 }
0x108a   :  { %1838 = vadd.xlane.f32.xlu0 %v1837_v27  ;;  %v1834_v51 = vsel %vm331_vm2, %v3170_v26, 0.0 }
0x108f   :  { %1935 = vrot.lane.b32.xlu1 %v3876_v43, %s3389_s25 }
0x10a0   :  { %1937 = vrot.lane.b32.xlu0 %v3873_v41, %s3389_s25 }
0x10a4   :  { %1931 = vrot.lane.b32.xlu0 %v3883_v44, %s3390_s26 }
0x10b3   :  { %1835 = vadd.xlane.f32.xlu1 %v1834_v51 }
0x10c4   :  { %1933 = vrot.lane.b32.xlu1 %v3894_v10, %s3390_s26 }
0x1105   :  { %v1639_v53 = vpop.xlane.xlu0 %1638 }
0x1106   :  { %3171 = vrcp.f32 %v1639_v53 }
0x1107   :  { %v1636_v54 = vpop.xlane.xlu1 %1635 }
0x1108   :  { %3173 = vrcp.f32 %v1636_v54 }
0x110b   :  { %v1936_v60 = vpop.permute.xlu1 %1935 }
0x1113   :  { %v3172_v15 = vpop.eup %3171  ;;  %v1839_v56 = vpop.xlane.xlu0 %1838 }
0x1114   :  { %v1643_v58 = vmul.f32 %v3172_v15, %v3164_v31  ;;  %3175 = vrcp.f32 %v1839_v56 }
0x1115   :  { %v3174_v55 = vpop.eup %3173 }
0x1116   :  { %v1642_v57 = vmul.f32 %v3174_v55, %v3166_v42 }
0x1117   :  { %v1938_v59 = vpop.permute.xlu0 %1937 }
0x1118   :  { %3014 = vmatprep.mubr.msk.f32.mxu0 %vm331_vm2, %v1642_v57 }
0x1119   :  { %3015 = vmatmul.mubr.msk.f32.vlgmr.msra.gmra.mxu0 %vm331_vm2, %v1643_v58 }
0x111a   :  { %3025 = vmatpush3.msra.mxu0 %v1847_v45 }
0x111b   :  { %3026 = vmatprep.subr.mxu0 %v1845_v52  ;;  %v1932_v18 = vpop.permute.xlu0 %1931 }
0x111c   :  { %3027 = vmatpush3.msra.mxu0 %v1845_v52 }
0x111d   :  { %3031 = vmatprep.subr.msk.mxu0 %vm245_vm1, %v1938_v59 }
0x1121   :  { %v3176_v62 = vpop.eup %3175 }
0x1122   :  { %v1843_v12 = vmul.f32 %v3176_v62, %v3168_v47 }
0x113c   :  { %v1836_v61 = vpop.xlane.xlu1 %1835 }
0x113d   :  { %3177 = vrcp.f32 %v1836_v61 }
0x1140   :  { %v1934_v19 = vpop.permute.xlu1 %1933 }
0x114a   :  { %v3178_v9 = vpop.eup %3177 }
0x114b   :  { %v1842_v17 = vmul.f32 %v3178_v9, %v3170_v26 }
0x114d   :  { %3028 = vmatprep.mubr.msk.f32.mxu0 %vm331_vm2, %v1842_v17 }
0x114e   :  { %3029 = vmatmul.mubr.msk.f32.vlgmr.msra.gmra.mxu0 %vm331_vm2, %v1843_v12 }
0x114f   :  { %3032 = vmatpush3.xpose.msk.msra.mxu0 %vm245_vm1, %v1938_v59  ;;  %3035 = vmatprep.mubr.msk.f32.mxu0 %vm245_vm1, %v1932_v18  ;;  %v3203_v18 = vld [vmem:[#allocation5 + $0x8] sm:$0xff] }
0x1150   :  { %3033 = vmatprep.subr.msk.mxu0 %vm245_vm1, %v1936_v60 }
0x1153   :  { %3034 = vmatpush3.xpose.msk.msra.mxu0 %vm245_vm1, %v1936_v60 }
0x1156   :  { %3036 = vmatmul.mubr.msk.f32.vlgmr.msra.gmra.mxu0 %vm245_vm1, %v1934_v19 }
0x11d9   :  { %v3948_v20 = vpop.f32.mrf.mxu0 }
0x11db   :  { %v3950_v21 = vpop.f32.mrf.mxu0 }
0x120e   :  { %v3952_v28 = vpop.f32.mrf.mxu0 }
0x1210   :  { %v3954_v30 = vpop.f32.mrf.mxu0 }
0x1216   :  { %v3037_v31 = vpop.f32.mrf.mxu0 }
0x1217   :  { %v2019_v35 = vadd.f32 %v3037_v31, %v3587_v23 }
0x1218   :  { %v2013_v40 = vpop.f32.mrf.mxu0 }
0x1219   :  { %v2014_v42 = vadd.f32 %v2013_v40, %v3589_v25  ;;  %v2025_v45 = vsel %vm331_vm2, %v2019_v35, -inf }
0x121a   :  { %2026 = vmax.xlane.f32.xlu1 %v2025_v45 }
0x121b   :  { %v2022_v16 = vsel %vm331_vm2, %v2014_v42, -inf }
0x121c   :  { %2023 = vmax.xlane.f32.xlu0 %v2022_v16 }
0x122b   :  { %2046 = vrot.lane.b32.xlu1 %v3873_v41, %s3391_s6 }
0x122f   :  { %2137 = vrot.lane.b32.xlu1 %v3873_v41, %s3392_s4 }
0x1233   :  { %2135 = vrot.lane.b32.xlu1 %v3876_v43, %s3392_s4 }
0x1237   :  { %2133 = vrot.lane.b32.xlu1 %v3894_v10, %s3393_s21 }
0x12a3   :  { %v2027_v23 = vpop.xlane.xlu1 %2026 }
0x12a4   :  { %v2029_v25 = vsub.f32 %v2019_v35, %v2027_v23  ;;  %v3204_v35 = vld [vmem:[#allocation5] sm:$0xff] }
0x12a5   :  { %v2024_v47 = vpop.xlane.xlu0 %2023 }
0x12a6   :  { %v2032_v27 = vmul.f32 1.442695, %v2029_v25  ;;  %v2028_v49 = vsub.f32 %v2014_v42, %v2024_v47 }
0x12a7   :  { %v2047_v50 = vpop.permute.xlu1 %2046 }
0x12a8   :  { %3179 = vpow2.f32 %v2032_v27  ;;  %v2030_v26 = vmul.f32 1.442695, %v2028_v49  ;;  %3038 = vmatprep.subr.mxu1 %v2047_v50 }
0x12a9   :  { %3039 = vmatpush3.msra.mxu1 %v2047_v50 }
0x12aa   :  { %3181 = vpow2.f32 %v2030_v26 }
0x12ab   :  { %v2138_v56 = vpop.permute.xlu1 %2137 }
0x12b5   :  { %v3180_v51 = vpop.eup %3179 }
0x12b6   :  { %v2037_v52 = vsel %vm331_vm2, %v3180_v51, 0.0 }
0x12b7   :  { %v3182_v53 = vpop.eup %3181  ;;  %2038 = vadd.xlane.f32.xlu0 %v2037_v52 }
0x12b8   :  { %v2034_v54 = vsel %vm331_vm2, %v3182_v53, 0.0 }
0x12bb   :  { %2035 = vadd.xlane.f32.xlu0 %v2034_v54 }
0x12d1   :  { %2044 = vrot.lane.b32.xlu0 %v3876_v43, %s3391_s6 }
0x12d5   :  { %2131 = vrot.lane.b32.xlu0 %v3883_v44, %s3393_s21  ;;  %v2136_v44 = vpop.permute.xlu1 %2135 }
0x12d9   :  { %v2134_v62 = vpop.permute.xlu1 %2133 }
0x1340   :  { %v2039_v10 = vpop.xlane.xlu0 %2038 }
0x1341   :  { %3183 = vrcp.f32 %v2039_v10 }
0x1344   :  { %v2036_v15 = vpop.xlane.xlu0 %2035 }
0x1345   :  { %3185 = vrcp.f32 %v2036_v15 }
0x1348   :  { %v2045_v55 = vpop.permute.xlu0 %2044 }
0x1349   :  { %3040 = vmatprep.subr.mxu1 %v2045_v55 }
0x134a   :  { %3041 = vmatpush3.msra.mxu1 %v2045_v55 }
0x134b   :  { %3045 = vmatprep.subr.msk.mxu1 %vm245_vm1, %v2138_v56 }
0x134c   :  { %v2132_v61 = vpop.permute.xlu0 %2131 }
0x134e   :  { %v3184_v57 = vpop.eup %3183 }
0x134f   :  { %v2043_v60 = vmul.f32 %v3184_v57, %v3180_v51 }
0x1352   :  { %v3186_v58 = vpop.eup %3185 }
0x1353   :  { %v2042_v59 = vmul.f32 %v3186_v58, %v3182_v53 }
0x1355   :  { %3042 = vmatprep.mubr.msk.f32.mxu1 %vm331_vm2, %v2042_v59 }
0x1356   :  { %3043 = vmatmul.mubr.msk.f32.vlgmr.msra.gmra.mxu1 %vm331_vm2, %v2043_v60 }
0x1357   :  { %3046 = vmatpush3.xpose.msk.msra.mxu1 %vm245_vm1, %v2138_v56  ;;  %3049 = vmatprep.mubr.msk.f32.mxu1 %vm245_vm1, %v2132_v61 }
0x1358   :  { %3047 = vmatprep.subr.msk.mxu1 %vm245_vm1, %v2136_v44 }
0x135b   :  { %3048 = vmatpush3.xpose.msk.msra.mxu1 %vm245_vm1, %v2136_v44 }
0x135c   :  { %3070 = vmatprep.subr.mxu1 %v3734_v5 }
0x135e   :  { %3050 = vmatmul.mubr.msk.f32.vlgmr.msra.gmra.mxu1 %vm245_vm1, %v2134_v62 }
0x135f   :  { %3071 = vmatpush3.msra.mxu1 %v3734_v5 }
0x1360   :  { %3072 = vmatprep.subr.mxu1 %v3741_v63 }
0x1361   :  { %3073 = vmatpush3.msra.mxu1 %v3741_v63 }
0x1362   :  { %3074 = vmatprep.subr.mxu1 %v3747_v2 }
0x1363   :  { %3075 = vmatpush3.msra.mxu1 %v3747_v2 }
0x1364   :  { %3076 = vmatprep.subr.mxu1 %v3754_v3 }
0x1365   :  { %3077 = vmatpush3.msra.mxu1 %v3754_v3 }
0x1416   :  { %v3044_v9 = vpop.f32.mrf.mxu1 }
0x1418   :  { %v2122_v17 = vpop.f32.mrf.mxu1 }
0x141e   :  { %v3051_v12 = vpop.f32.mrf.mxu1 }
0x141f   :  { %v2219_v19 = vadd.f32 %v3203_v18, %v3051_v12 }
0x1420   :  { %v2213_v31 = vpop.f32.mrf.mxu1 }
0x1421   :  { %v2214_v5 = vadd.f32 %v3204_v35, %v2213_v31  ;;  %v2225_v40 = vsel %vm331_vm2, %v2219_v19, -inf }
0x1422   :  { %2226 = vmax.xlane.f32.xlu1 %v2225_v40 }
0x1423   :  { %v2222_v63 = vsel %vm331_vm2, %v2214_v5, -inf }
0x1424   :  { %2223 = vmax.xlane.f32.xlu0 %v2222_v63 }
0x1433   :  { %2246 = vrot.lane.b32.xlu1 %v3873_v41, %s3394_s7 }
0x1437   :  { %2333 = vrot.lane.b32.xlu1 %v3954_v30, %s3378_s24 }
0x143b   :  { %2335 = vrot.lane.b32.xlu1 %v3952_v28, %s3378_s24 }
0x143f   :  { %2343 = vrot.lane.b32.xlu1 %v3044_v9, %s3395_s27 }
0x14ab   :  { %v2227_v2 = vpop.xlane.xlu1 %2226 }
0x14ac   :  { %v2229_v3 = vsub.f32 %v2219_v19, %v2227_v2 }
0x14ad   :  { %v2224_v42 = vpop.xlane.xlu0 %2223 }
0x14ae   :  { %v2232_v45 = vmul.f32 1.442695, %v2229_v3  ;;  %v2228_v16 = vsub.f32 %v2214_v5, %v2224_v42 }
0x14af   :  { %v2247_v23 = vpop.permute.xlu1 %2246 }
0x14b0   :  { %3187 = vpow2.f32 %v2232_v45  ;;  %v2230_v25 = vmul.f32 1.442695, %v2228_v16  ;;  %3052 = vmatprep.subr.mxu0 %v2247_v23 }
0x14b1   :  { %3053 = vmatpush3.msra.mxu0 %v2247_v23 }
0x14b2   :  { %3189 = vpow2.f32 %v2230_v25 }
0x14bd   :  { %v3188_v41 = vpop.eup %3187 }
0x14be   :  { %v2237_v47 = vsel %vm331_vm2, %v3188_v41, 0.0 }
0x14bf   :  { %v3190_v30 = vpop.eup %3189  ;;  %2238 = vadd.xlane.f32.xlu0 %v2237_v47 }
0x14c0   :  { %v2234_v28 = vsel %vm331_vm2, %v3190_v30, 0.0 }
0x14c3   :  { %2235 = vadd.xlane.f32.xlu0 %v2234_v28 }
0x14d9   :  { %2244 = vrot.lane.b32.xlu0 %v3876_v43, %s3394_s7 }
0x14dd   :  { %2341 = vrot.lane.b32.xlu0 %v2122_v17, %s3395_s27 }
0x1548   :  { %v2239_v27 = vpop.xlane.xlu0 %2238 }
0x1549   :  { %3191 = vrcp.f32 %v2239_v27 }
0x154c   :  { %v2236_v49 = vpop.xlane.xlu0 %2235 }
0x154d   :  { %3193 = vrcp.f32 %v2236_v49 }
0x1550   :  { %v2245_v50 = vpop.permute.xlu0 %2244 }
0x1551   :  { %3054 = vmatprep.subr.mxu0 %v2245_v50 }
0x1552   :  { %3055 = vmatpush3.msra.mxu0 %v2245_v50 }
0x1553   :  { %3059 = vmatprep.subr.mxu0 %v3684_v14 }
0x1556   :  { %v3192_v26 = vpop.eup %3191 }
0x1557   :  { %v2243_v53 = vmul.f32 %v3192_v26, %v3188_v41 }
0x155a   :  { %v3194_v51 = vpop.eup %3193 }
0x155b   :  { %v2242_v52 = vmul.f32 %v3194_v51, %v3190_v30 }
0x155d   :  { %3056 = vmatprep.mubr.msk.f32.mxu0 %vm331_vm2, %v2242_v52 }
0x155e   :  { %3057 = vmatmul.mubr.msk.f32.vlgmr.msra.gmra.mxu0 %vm331_vm2, %v2243_v53 }
0x155f   :  { %3060 = vmatpush3.msra.mxu0 %v3684_v14  ;;  %v2334_v14 = vpop.permute.xlu1 %2333 }
0x1560   :  { %3061 = vmatprep.subr.mxu0 %v3689_v32  ;;  %v2355_v55 = vsel %vm245_vm1, %v3950_v21, %v2334_v14 }
0x1561   :  { %3062 = vmatpush3.msra.mxu0 %v3689_v32  ;;  %v2342_v32 = vpop.permute.xlu0 %2341 }
0x1562   :  { %3063 = vmatprep.subr.mxu0 %v3698_v33 }
0x1563   :  { %3064 = vmatpush3.msra.mxu0 %v3698_v33  ;;  %v2336_v10 = vpop.permute.xlu1 %2335 }
0x1564   :  { %3065 = vmatprep.subr.mxu0 %v3705_v34  ;;  %v2356_v56 = vsel %vm245_vm1, %v3948_v20, %v2336_v10 }
0x1565   :  { %3066 = vmatpush3.msra.mxu0 %v3705_v34  ;;  %v2357_v34 = vsel %vm331_vm2, %v2355_v55, %v2342_v32 }
0x1566   :  { %3081 = vmatprep.subr.mxu0 %v3762_v6 }
0x1567   :  { %v2344_v15 = vpop.permute.xlu1 %2343 }
0x1568   :  { %v2358_v58 = vsel %vm331_vm2, %v2356_v56, %v2344_v15 }
0x161e   :  { %v3058_v43 = vpop.f32.mrf.mxu0 }
0x161f   :  { %2351 = vrot.lane.b32.xlu1 %v3058_v43, %s3396_s22 }
0x1620   :  { %v2322_v54 = vpop.f32.mrf.mxu0 }
0x1621   :  { %2349 = vrot.lane.b32.xlu0 %v2322_v54, %s3396_s22 }
0x1691   :  { %v2352_v33 = vpop.permute.xlu1 %2351 }
0x1692   :  { %v2360_v60 = vsel %vm1069_vm3, %v2358_v58, %v2352_v33 }
0x1693   :  { %v2350_v57 = vpop.permute.xlu0 %2349 }
0x1694   :  { %v2359_v59 = vsel %vm1069_vm3, %v2357_v34, %v2350_v57 }
0x1695   :  { %3067 = vmatprep.mubr.msk.f32.mxu0 %vm155_vm0, %v2359_v59 }
0x1696   :  { %3068 = vmatmul.mubr.msk.f32.vlgmr.msra.gmra.mxu0 %vm155_vm0, %v2360_v60 }
0x1697   :  { %3082 = vmatpush3.msra.mxu0 %v3762_v6 }
0x1698   :  { %3083 = vmatprep.subr.mxu0 %v3767_v7 }
0x1699   :  { %3084 = vmatpush3.msra.mxu0 %v3767_v7 }
0x169a   :  { %3085 = vmatprep.subr.mxu0 %v3775_v11 }
0x169b   :  { %3086 = vmatpush3.msra.mxu0 %v3775_v11 }
0x169c   :  { %3087 = vmatprep.subr.mxu0 %v3782_v13 }
0x169d   :  { %3088 = vmatpush3.msra.mxu0 %v3782_v13 }
0x169e   :  { %3089 = vmatprep.subr.mxu0 %v3808_v39 }
0x169f   :  { %3090 = vmatpush3.msra.mxu0 %v3808_v39 }
0x16a0   :  { %3091 = vmatprep.subr.mxu0 %v3815_v0 }
0x16a1   :  { %3092 = vmatpush3.msra.mxu0 %v3815_v0 }
0x16a2   :  { %3093 = vmatprep.subr.mxu0 %v3822_v1 }
0x16a3   :  { %3094 = vmatpush3.msra.mxu0 %v3822_v1 }
0x16a4   :  { %3095 = vmatprep.subr.mxu0 %v3829_v4 }
0x16a5   :  { %3096 = vmatpush3.msra.mxu0 %v3829_v4 }
0x1756   :  { %v3069_v6 = vpop.f32.mrf.mxu0 }
0x1757   :  { %v2439_v7 = vadd.f32 %v3069_v6, %v3721_v48 }
0x1758   :  { %v2433_v11 = vpop.f32.mrf.mxu0 }
0x1759   :  { %v2434_v13 = vadd.f32 %v3721_v48, %v2433_v11  ;;  %v2443_v39 = vadd.f32 %v2439_v7, %v3866_v38 }
0x175b   :  { %v2447_v20 = vsel %vm155_vm0, %v2443_v39, 0.0  ;;  %v2442_v0 = vadd.f32 %v2434_v13, %v3863_v37 }
0x175c   :  { %2448 = vadd.xlane.f32.xlu1 %v2447_v20 }
0x175d   :  { %v2444_v21 = vsel %vm155_vm0, %v2442_v0, 0.0 }
0x175e   :  { %2445 = vadd.xlane.f32.xlu0 %v2444_v21 }
0x17e5   :  { %v2449_v1 = vpop.xlane.xlu1 %2448 }
0x17e6   :  { %v2451_v61 = vmul.f32 0.03125, %v2449_v1 }
0x17e7   :  { %v2446_v44 = vpop.xlane.xlu0 %2445 }
0x17e8   :  { %v2450_v4 = vmul.f32 0.03125, %v2446_v44  ;;  %v2453_v62 = vsub.f32 %v2443_v39, %v2451_v61 }
0x17ea   :  { %v2452_v9 = vsub.f32 %v2442_v0, %v2450_v4  ;;  %v2455_v48 = vmul.f32 %v2453_v62, %v2453_v62 }
0x17ec   :  { %v2454_v17 = vmul.f32 %v2452_v9, %v2452_v9  ;;  %v2459_v38 = vsel %vm155_vm0, %v2455_v48, 0.0 }
0x17ee   :  { %v2456_v12 = vsel %vm155_vm0, %v2454_v17, 0.0 }
0x17ef   :  { %2457 = vadd.xlane.f32.xlu0 %v2456_v12 }
0x17f3   :  { %2460 = vadd.xlane.f32.xlu0 %v2459_v38 }
0x1878   :  { %v2458_v18 = vpop.xlane.xlu0 %2457 }
0x1879   :  { %v2462_v37 = vmul.f32 0.03125, %v2458_v18 }
0x187b   :  { %v2464_v19 = vadd.f32 1e-05, %v2462_v37 }
0x187c   :  { %v2461_v31 = vpop.xlane.xlu0 %2460 }
0x187d   :  { %3195 = vrsqrt.f32 %v2464_v19  ;;  %v2463_v35 = vmul.f32 0.03125, %v2461_v31 }
0x187f   :  { %v2465_v5 = vadd.f32 1e-05, %v2463_v35 }
0x1881   :  { %3197 = vrsqrt.f32 %v2465_v5 }
0x188a   :  { %v3196_v40 = vpop.eup %3195 }
0x188b   :  { %v2468_v63 = vmul.f32 %v3196_v40, %v2452_v9 }
0x188d   :  { %v2470_v2 = vmul.f32 %v3788_v24, %v2468_v63 }
0x188e   :  { %v3198_v3 = vpop.eup %3197 }
0x188f   :  { %v2469_v42 = vmul.f32 %v3198_v3, %v2453_v62  ;;  %v2472_v45 = vadd.f32 %v3790_v29, %v2470_v2 }
0x1891   :  { %3078 = vmatprep.mubr.msk.f32.mxu1 %vm155_vm0, %v2472_v45  ;;  %v2471_v16 = vmul.f32 %v3788_v24, %v2469_v42 }
0x1893   :  { %v2473_v23 = vadd.f32 %v3790_v29, %v2471_v16 }
0x1895   :  { %3079 = vmatmul.mubr.msk.f32.vlgmr.msra.gmra.mxu1 %vm155_vm0, %v2473_v23 }
0x1955   :  { %v3080_v25 = vpop.f32.mrf.mxu1 }
0x1956   :  { %v2552_v41 = vadd.f32 %v3080_v25, %v3833_v8 }
0x1957   :  { %v2546_v47 = vpop.f32.mrf.mxu1 }
0x1958   :  { %v2547_v30 = vadd.f32 %v3833_v8, %v2546_v47  ;;  %v2556_v27 = vmax.f32 %v2552_v41, 0.0 }
0x195a   :  { %v2555_v28 = vmax.f32 %v2547_v30, 0.0 }
0x195c   :  { %3097 = vmatprep.mubr.msk.f32.mxu0 %vm1320_vm4, %v2555_v28 }
0x195d   :  { %3098 = vmatmul.mubr.msk.f32.vlgmr.msra.gmra.mxu0 %vm1320_vm4, %v2556_v27 }
0x1a1d   :  { %v3099_v49 = vpop.f32.mrf.mxu0 }
0x1a1e   :  { %v2635_v50 = vadd.f32 %v3099_v49, %v3842_v46 }
0x1a1f   :  { %v2629_v24 = vpop.f32.mrf.mxu0 }
0x1a20   :  { %v2639_v26 = vadd.f32 %v2635_v50, %v2473_v23  ;;  %v2630_v29 = vadd.f32 %v3842_v46, %v2629_v24 }
0x1a22   :  { %v2638_v51 = vadd.f32 %v2630_v29, %v2472_v45  ;;  %v2643_v52 = vsel %vm155_vm0, %v2639_v26, 0.0 }
0x1a23   :  { %2644 = vadd.xlane.f32.xlu0 %v2643_v52 }
0x1a24   :  { %v2640_v53 = vsel %vm155_vm0, %v2638_v51, 0.0 }
0x1a25   :  { %2641 = vadd.xlane.f32.xlu1 %v2640_v53 }
0x1aac   :  { %v2645_v8 = vpop.xlane.xlu0 %2644 }
0x1aad   :  { %v2647_v43 = vmul.f32 0.03125, %v2645_v8 }
0x1aae   :  { %v2642_v54 = vpop.xlane.xlu1 %2641 }
0x1aaf   :  { %v2649_v14 = vsub.f32 %v2639_v26, %v2647_v43  ;;  %v2646_v10 = vmul.f32 0.03125, %v2642_v54 }
0x1ab1   :  { %v2648_v15 = vsub.f32 %v2638_v51, %v2646_v10  ;;  %v2651_v32 = vmul.f32 %v2649_v14, %v2649_v14 }
0x1ab3   :  { %v2655_v55 = vsel %vm155_vm0, %v2651_v32, 0.0  ;;  %v2650_v33 = vmul.f32 %v2648_v15, %v2648_v15 }
0x1ab4   :  { %2656 = vadd.xlane.f32.xlu0 %v2655_v55 }
0x1ab5   :  { %v2652_v46 = vsel %vm155_vm0, %v2650_v33, 0.0 }
0x1ab6   :  { %2653 = vadd.xlane.f32.xlu1 %v2652_v46 }
0x1b3d   :  { %v2657_v56 = vpop.xlane.xlu0 %2656 }
0x1b3e   :  { %v2659_v34 = vmul.f32 0.03125, %v2657_v56 }
0x1b3f   :  { %v2654_v57 = vpop.xlane.xlu1 %2653 }
0x1b40   :  { %v2661_v58 = vadd.f32 1e-05, %v2659_v34  ;;  %v2658_v59 = vmul.f32 0.03125, %v2654_v57 }
0x1b42   :  { %3199 = vrsqrt.f32 %v2661_v58  ;;  %v2660_v60 = vadd.f32 1e-05, %v2658_v59 }
0x1b44   :  { %3201 = vrsqrt.f32 %v2660_v60 }
0x1b4f   :  { %v3200_v6 = vpop.eup %3199 }
0x1b50   :  { %v2665_v7 = vmul.f32 %v3200_v6, %v2649_v14 }
0x1b51   :  { %v3202_v11 = vpop.eup %3201 }
0x1b52   :  { %v2664_v13 = vmul.f32 %v3202_v11, %v2648_v15  ;;  %v2667_v39 = vmul.f32 %v3853_v22, %v2665_v7 }
0x1b54   :  { %v2666_v20 = vmul.f32 %v3853_v22, %v2664_v13  ;;  %v2669_v0 = vadd.f32 %v3860_v36, %v2667_v39 }
0x1b56   :  { %v2668_v21 = vadd.f32 %v3860_v36, %v2666_v20  ;;  %2671 = vst.msk [vmem:[#allocation14 + $0x8] sm:$0xff] %vm155_vm0, %v2669_v0 }
0x1b58   :  { %2670 = vst.msk [vmem:[#allocation14] sm:$0xff] %vm155_vm0, %v2668_v21 }
0x1b59   :  { %3356 = shalt.err (!%p3353_p11)
}
0x1b5a   :  { %2683 = dma.vmem_to_hbm [thread:$0]  %s2678_s14, 256, %s4093_s15, [#allocation4], %s3377_s23, %s3377_s23, %s3378_s24  }
0x1b5b   :  { %3373 = dma.done.wait [#allocation4], 256  }
0x1b5c   :  { %3374 = vsyncadd [#allocation4], 4294967040 }
0x1b5d   :  { %2687 = vsyncpa [#allocation3], 1 }
0x1b5e   :  { %2688 = vsyncpa [#allocation6], 1 }
0x1b5f   :  { %2689 = vsyncpa [#allocation9], 1 }
0x1b60   :  { %2690 = vsyncpa [#allocation12], 1 }
0x1b61   :  { %2691 = vsyncpa [#allocation4], 1 }

</bundles_post_ra>
